<compile_context>
chip_gen: v6e
topology: v6e:2x2x1
jax: 0.10.0
libtpu: 0.0.40
codegen_flags: <defaults>
</compile_context>

<pallas_src>
import functools

import jax
import jax.numpy as jnp
from jax.experimental import pallas as pl
from jax.experimental.pallas import tpu as pltpu


def _pick_q_tile(n):
    # Largest 128-aligned divisor of N up to 512 (review: tq = 256-512); fall
    # back to the full spatial extent when N is not 128-aligned.
    for t in (512, 384, 256, 128):
        if n % t == 0:
            return t
    return n


def _has_bf16_eup():
    # bf16 transcendentals exist on v6e/v7x; v5e and older are fp32-only EUP.
    try:
        kind = jax.devices()[0].device_kind.lower()
    except Exception:  # pragma: no cover - conservative default
        return False
    return ("v6" in kind) or ("v7" in kind)


# ----------------------------------------------------------------------------
# Fused Self_Attn kernel: grid = (batch, q-tile)
# ----------------------------------------------------------------------------
def _self_attn_kernel(gamma_ref, x_ref, w_ref, b_ref, o_ref, qkv_ref,
                      *, c8, tq, bf16_exp):
    qi = pl.program_id(1)

    # ---- fused q/k/v projection: one wide MXU matmul, once per batch -------
    @pl.when(qi == 0)
    def _():
        xb = x_ref[0].astype(jnp.bfloat16)                        # (C, N)
        qkv = jnp.dot(w_ref[...], xb,
                      preferred_element_type=jnp.float32) + b_ref[...]
        qkv_ref[...] = qkv.astype(jnp.bfloat16)                   # (2*C8+C, N)

    q_start = pl.multiple_of(qi * tq, tq)
    q = qkv_ref[0:c8, pl.ds(q_start, tq)]                         # (C8, tq) bf16
    k = qkv_ref[c8:2 * c8, :]                                     # (C8, N)  bf16
    v = qkv_ref[2 * c8:, :]                                       # (C, N)   bf16

    # energy[i, j] = <q[:, i], k[:, j]>  -> (tq, N) fp32 accumulation
    energy = jax.lax.dot_general(q, k, (((0,), (0,)), ((), ())),
                                 preferred_element_type=jnp.float32)

    # softmax over keys (dim=-1): max/sum in fp32; exp arg in bf16 only where
    # the EUP supports it (v6e/v7x), fp32 otherwise (v5e).
    m = jnp.max(energy, axis=-1, keepdims=True)
    exp_dtype = jnp.bfloat16 if bf16_exp else jnp.float32
    e = jnp.exp((energy - m).astype(exp_dtype))
    denom = jnp.sum(e.astype(jnp.float32), axis=-1, keepdims=True)
    attn = (e * pl.reciprocal(denom, approx=True)).astype(jnp.bfloat16)

    # out[c, i] = sum_j v[c, j] * attn[i, j]  -> (C, tq) fp32
    out = jax.lax.dot_general(v, attn, (((1,), (1,)), ((), ())),
                              preferred_element_type=jnp.float32)

    x_tile = x_ref[0, :, pl.ds(q_start, tq)]                      # (C, tq) fp32
    gamma = gamma_ref[0, 0]
    o_ref[0] = (gamma * out + x_tile).astype(o_ref.dtype)


def self_attn_forward(params, x):
    """Pallas implementation of Self_Attn.forward(x): gamma*attn_out + x."""
    B, C, H, W = x.shape
    N = H * W
    assert C % 8 == 0, "in_dim must be divisible by 8 (module uses in_dim // 8)"
    C8 = C // 8
    C_total = 2 * C8 + C
    tq = _pick_q_tile(N)
    nq = N // tq
    bf16_exp = _has_bf16_eup()

    # (B, C, H, W) -> (B, C, N): metadata-only, native lane-dense layout.
    x_cn = x.reshape(B, C, N).astype(jnp.float32)

    # Concatenated 1x1-conv weights (C_out_total, C_in) in bf16, fp32 biases.
    w_all = jnp.concatenate(
        [params["wq"], params["wk"], params["wv"]], axis=0).astype(jnp.bfloat16)
    b_all = jnp.concatenate(
        [params["bq"], params["bk"], params["bv"]]).reshape(C_total, 1)
    b_all = b_all.astype(jnp.float32)
    gamma_s = params["gamma"].reshape(1, 1).astype(jnp.float32)

    flops = 2 * B * (N * C * C_total + N * N * C8 + N * N * C)
    bytes_accessed = 2 * B * N * C * 4 + w_all.size * 2 + b_all.size * 4

    # Per-step VMEM footprint (double-buffered I/O + persistent q/k/v scratch
    # + softmax temporaries), with headroom; capped below v7x's 64 MiB.
    vmem_bytes = (2 * C * N * 4 + 2 * C * tq * 4
                  + 2 * (w_all.size * 2 + b_all.size * 4)
                  + C_total * N * 2
                  + 6 * tq * N * 4)
    vmem_limit = min(max(2 * vmem_bytes, 32 * 1024 * 1024), 48 * 1024 * 1024)

    kernel = functools.partial(_self_attn_kernel, c8=C8, tq=tq,
                               bf16_exp=bf16_exp)

    out_cn = pl.pallas_call(
        kernel,
        out_shape=jax.ShapeDtypeStruct((B, C, N), jnp.float32),
        grid=(B, nq),
        in_specs=[
            pl.BlockSpec(memory_space=pltpu.MemorySpace.SMEM),     # gamma
            pl.BlockSpec((1, C, N), lambda b, qi: (b, 0, 0)),      # x (C, N) slab
            # Constant-index operands; Pallas fetches them once.
            # TODO(synk): single-buffer these (pipeline_mode) to drop the
            # redundant second weight buffer when C is large.
            pl.BlockSpec((C_total, C), lambda b, qi: (0, 0)),      # [wq;wk;wv]
            pl.BlockSpec((C_total, 1), lambda b, qi: (0, 0)),      # [bq;bk;bv]
        ],
        out_specs=pl.BlockSpec((1, C, tq), lambda b, qi: (b, 0, qi)),
        scratch_shapes=[pltpu.VMEM((C_total, N), jnp.bfloat16)],   # q/k/v
        compiler_params=pltpu.CompilerParams(
            # q-tile axis is "arbitrary": it carries the per-batch K/V scratch.
            dimension_semantics=("parallel", "arbitrary"),
            vmem_limit_bytes=vmem_limit),
        cost_estimate=pl.CostEstimate(
            flops=flops, transcendentals=B * N * N,
            bytes_accessed=bytes_accessed),
    )(gamma_s, x_cn, w_all, b_all)

    # metadata-only reshape back to (B, C, H, W)
    return out_cn.reshape(B, C, H, W)


# ----------------------------------------------------------------------------
# Pure-JAX reference (mirrors the PyTorch forward exactly, fp32 end-to-end)
# ----------------------------------------------------------------------------
def self_attn_reference(params, x):
    B, C, H, W = x.shape
    N = H * W
    xf = x.reshape(B, C, N)

    def conv1x1(w, b):
        return jnp.einsum("oc,bcn->bon", w, xf) + b[None, :, None]

    q = conv1x1(params["wq"], params["bq"])            # (B, C//8, N)
    k = conv1x1(params["wk"], params["bk"])            # (B, C//8, N)
    v = conv1x1(params["wv"], params["bv"])            # (B, C, N)
    energy = jnp.einsum("bdn,bdm->bnm", q, k)          # bmm(q^T, k)
    attn = jax.nn.softmax(energy, axis=-1)
    out = jnp.einsum("bcm,bnm->bcn", v, attn)          # bmm(v, attn^T)
    out = out.reshape(B, C, H, W)
    return params["gamma"][0] * out + x


# ----------------------------------------------------------------------------
# Deterministic synthetic parameters (1x1 convs stored as (C_out, C_in))
# ----------------------------------------------------------------------------
def init_params(key, in_dim):
    kq, kk, kv, kbq, kbk, kbv, kg = jax.random.split(key, 7)
    c8 = in_dim // 8
    s = 1.0 / jnp.sqrt(in_dim)
    return {
        "wq": jax.random.normal(kq, (c8, in_dim), jnp.float32) * s,
        "bq": jax.random.normal(kbq, (c8,), jnp.float32) * 0.05,
        "wk": jax.random.normal(kk, (c8, in_dim), jnp.float32) * s,
        "bk": jax.random.normal(kbk, (c8,), jnp.float32) * 0.05,
        "wv": jax.random.normal(kv, (in_dim, in_dim), jnp.float32) * s,
        "bv": jax.random.normal(kbv, (in_dim,), jnp.float32) * 0.05,
        # nn.Parameter(torch.zeros(1)) in the module; use a nonzero value here
        # so the attention path actually contributes to the tested output.
        "gamma": jax.random.normal(kg, (1,), jnp.float32) * 0.5,
    }


if __name__ == "__main__":
    key = jax.random.PRNGKey(0)
    pkey, xkey = jax.random.split(key)
    B, C, H, W = 2, 128, 16, 16            # in_dim=128 (divisible by 8), N=256
    params = init_params(pkey, C)
    x = jax.random.normal(xkey, (B, C, H, W), jnp.float32)

    fwd = jax.jit(self_attn_forward)
    y = fwd(params, x)
    jax.block_until_ready(y)

    assert y.shape == (B, C, H, W), y.shape
    assert bool(jnp.all(jnp.isfinite(y)))

    y_ref = self_attn_reference(params, x)
    max_err = float(jnp.max(jnp.abs(y - y_ref)))
    assert max_err < 1e-1, f"max abs error vs reference: {max_err}"

    print("KERNEL_OK")
</pallas_src>

<mosaic_0001>
module attributes {stable_mosaic.version = 11 : i64} {
  func.func @_self_attn_kernel(%arg0: i32, %arg1: i32, %arg2: memref<1x1xf32, #tpu.memory_space<smem>>, %arg3: memref<1x128x256xf32, #tpu.memory_space<vmem>>, %arg4: memref<160x128xbf16, #tpu.memory_space<vmem>>, %arg5: memref<160x1xf32, #tpu.memory_space<vmem>>, %arg6: memref<1x128x256xf32, #tpu.memory_space<vmem>>, %arg7: memref<160x256xbf16, #tpu.memory_space<vmem>>) attributes {dimension_semantics = [#tpu.dimension_semantics<parallel>, #tpu.dimension_semantics<arbitrary>], iteration_bounds = array<i64: 2, 1>, scalar_prefetch = 0 : i64, scratch_operands = 1 : i64, tpu.core_type = #tpu.core_type<tc>, window_params = [{transform_indices = @transform_0, window_bounds = array<i64: 1, 1>}, {transform_indices = @transform_1, window_bounds = array<i64: 1, 128, 256>}, {pipeline_mode = #tpu.pipeline_mode<synchronous>, transform_indices = @transform_2, window_bounds = array<i64: 160, 128>}, {pipeline_mode = #tpu.pipeline_mode<synchronous>, transform_indices = @transform_3, window_bounds = array<i64: 160, 1>}, {transform_indices = @transform_4, window_bounds = array<i64: 1, 128, 256>}]} {
    %c0_i32 = arith.constant 0 : i32
    %0 = arith.cmpi eq, %arg1, %c0_i32 : i32
    %1 = arith.extui %0 : i1 to i32
    %c0_i32_0 = arith.constant 0 : i32
    %2 = arith.cmpi ne, %1, %c0_i32_0 : i32
    scf.if %2 {
      %c0_13 = arith.constant 0 : index
      %c0_14 = arith.constant 0 : index
      %c0_15 = arith.constant 0 : index
      %32 = vector.load %arg3[%c0_13, %c0_14, %c0_15] : memref<1x128x256xf32, #tpu.memory_space<vmem>>, vector<1x128x256xf32>
      %33 = vector.shape_cast %32 : vector<1x128x256xf32> to vector<128x256xf32>
      %34 = arith.truncf %33 : vector<128x256xf32> to vector<128x256xbf16>
      %c0_16 = arith.constant 0 : index
      %c0_17 = arith.constant 0 : index
      %35 = vector.load %arg4[%c0_16, %c0_17] : memref<160x128xbf16, #tpu.memory_space<vmem>>, vector<160x128xbf16>
      %cst_18 = arith.constant dense<0.000000e+00> : vector<160x256xf32>
      %36 = tpu.matmul %35, %34, %cst_18 {dimension_numbers = #tpu.dot_dimension_numbers<[1], [0], [0], [1], [0, 0, 1, 1], [], []>} : vector<160x128xbf16>, vector<128x256xbf16>, vector<160x256xf32> -> vector<160x256xf32>
      %c0_19 = arith.constant 0 : index
      %c0_20 = arith.constant 0 : index
      %37 = vector.load %arg5[%c0_19, %c0_20] : memref<160x1xf32, #tpu.memory_space<vmem>>, vector<160x1xf32>
      %38 = vector.broadcast %37 : vector<160x1xf32> to vector<160x256xf32>
      %39 = arith.addf %36, %38 : vector<160x256xf32>
      %40 = arith.truncf %39 : vector<160x256xf32> to vector<160x256xbf16>
      %c0_21 = arith.constant 0 : index
      %c0_22 = arith.constant 0 : index
      %41 = vector.load %arg7[%c0_21, %c0_22] : memref<160x256xbf16, #tpu.memory_space<vmem>>, vector<160x256xbf16>
      tpu.vector_store %arg7[%c0_21, %c0_22], %40 {strides = array<i32>} : memref<160x256xbf16, #tpu.memory_space<vmem>>, vector<160x256xbf16>,
    } else {
    }
    %c256_i32 = arith.constant 256 : i32
    %3 = arith.muli %arg1, %c256_i32 : i32
    %4 = tpu.assume_multiple %3, 256 : i32
    %c0 = arith.constant 0 : index
    %5 = arith.index_cast %4 : i32 to index
    %6 = vector.load %arg7[%c0, %5] : memref<160x256xbf16, #tpu.memory_space<vmem>>, vector<16x256xbf16>
    %c16 = arith.constant 16 : index
    %c0_1 = arith.constant 0 : index
    %7 = vector.load %arg7[%c16, %c0_1] : memref<160x256xbf16, #tpu.memory_space<vmem>>, vector<16x256xbf16>
    %c32 = arith.constant 32 : index
    %c0_2 = arith.constant 0 : index
    %8 = vector.load %arg7[%c32, %c0_2] : memref<160x256xbf16, #tpu.memory_space<vmem>>, vector<128x256xbf16>
    %cst = arith.constant dense<0.000000e+00> : vector<256x256xf32>
    %9 = tpu.matmul %6, %7, %cst {dimension_numbers = #tpu.dot_dimension_numbers<[0], [0], [1], [1], [0, 1, 1, 1], [], []>} : vector<16x256xbf16>, vector<16x256xbf16>, vector<256x256xf32> -> vector<256x256xf32>
    %cst_3 = arith.constant dense<0xFF800000> : vector<256xf32>
    %10 = vector.multi_reduction <maximumf>, %9, %cst_3 [1] : vector<256x256xf32> to vector<256xf32>
    %11 = vector.shape_cast %10 : vector<256xf32> to vector<256x1xf32>
    %12 = vector.broadcast %11 : vector<256x1xf32> to vector<256x256xf32>
    %13 = arith.subf %9, %12 : vector<256x256xf32>
    %14 = math.exp %13 : vector<256x256xf32>
    %cst_4 = arith.constant dense<0.000000e+00> : vector<256xf32>
    %15 = vector.multi_reduction <add>, %14, %cst_4 [1] : vector<256x256xf32> to vector<256xf32>
    %16 = vector.shape_cast %15 : vector<256xf32> to vector<256x1xf32>
    %17 = tpu.reciprocal %16 {approx = true} : vector<256x1xf32> -> vector<256x1xf32>
    %18 = vector.broadcast %17 : vector<256x1xf32> to vector<256x256xf32>
    %19 = arith.mulf %14, %18 : vector<256x256xf32>
    %20 = arith.truncf %19 : vector<256x256xf32> to vector<256x256xbf16>
    %cst_5 = arith.constant dense<0.000000e+00> : vector<128x256xf32>
    %21 = tpu.matmul %8, %20, %cst_5 {dimension_numbers = #tpu.dot_dimension_numbers<[1], [1], [0], [0], [0, 0, 1, 0], [], []>} : vector<128x256xbf16>, vector<256x256xbf16>, vector<128x256xf32> -> vector<128x256xf32>
    %c0_6 = arith.constant 0 : index
    %c0_7 = arith.constant 0 : index
    %22 = arith.index_cast %4 : i32 to index
    %23 = vector.load %arg3[%c0_6, %c0_7, %22] : memref<1x128x256xf32, #tpu.memory_space<vmem>>, vector<1x128x256xf32>
    %24 = vector.shape_cast %23 : vector<1x128x256xf32> to vector<128x256xf32>
    %c0_8 = arith.constant 0 : index
    %c0_9 = arith.constant 0 : index
    %25 = memref.load %arg2[%c0_8, %c0_9] : memref<1x1xf32, #tpu.memory_space<smem>>
    %26 = vector.broadcast %25 : f32 to vector<128x256xf32>
    %27 = arith.mulf %26, %21 : vector<128x256xf32>
    %28 = arith.addf %27, %24 : vector<128x256xf32>
    %c0_10 = arith.constant 0 : index
    %c0_11 = arith.constant 0 : index
    %c0_12 = arith.constant 0 : index
    %29 = vector.load %arg6[%c0_10, %c0_11, %c0_12] : memref<1x128x256xf32, #tpu.memory_space<vmem>>, vector<1x128x256xf32>
    %30 = vector.shape_cast %29 : vector<1x128x256xf32> to vector<128x256xf32>
    %31 = vector.shape_cast %28 : vector<128x256xf32> to vector<1x128x256xf32>
    tpu.vector_store %arg6[%c0_10, %c0_11, %c0_12], %31 {strides = array<i32>} : memref<1x128x256xf32, #tpu.memory_space<vmem>>, vector<1x128x256xf32>,
    return
  }
  func.func @transform_0(%arg0: i32, %arg1: i32) -> (i32, i32) {
    %c0_i32 = arith.constant 0 : i32
    %c0_i32_0 = arith.constant 0 : i32
    %c0_i32_1 = arith.constant 0 : i32
    return %c0_i32, %c0_i32_0 : i32, i32
  }
  func.func @transform_1(%arg0: i32, %arg1: i32) -> (i32, i32, i32) {
    %c0_i32 = arith.constant 0 : i32
    %c0_i32_0 = arith.constant 0 : i32
    %c0_i32_1 = arith.constant 0 : i32
    return %arg0, %c0_i32, %c0_i32_0 : i32, i32, i32
  }
  func.func @transform_2(%arg0: i32, %arg1: i32) -> (i32, i32) {
    %c0_i32 = arith.constant 0 : i32
    %c0_i32_0 = arith.constant 0 : i32
    %c0_i32_1 = arith.constant 0 : i32
    return %c0_i32, %c0_i32_0 : i32, i32
  }
  func.func @transform_3(%arg0: i32, %arg1: i32) -> (i32, i32) {
    %c0_i32 = arith.constant 0 : i32
    %c0_i32_0 = arith.constant 0 : i32
    %c0_i32_1 = arith.constant 0 : i32
    return %c0_i32, %c0_i32_0 : i32, i32
  }
  func.func @transform_4(%arg0: i32, %arg1: i32) -> (i32, i32, i32) {
    %c0_i32 = arith.constant 0 : i32
    %c0_i32_0 = arith.constant 0 : i32
    return %arg0, %c0_i32, %arg1 : i32, i32, i32
  }
}

</mosaic_0001>

<bundles_post_ra>
// kernel: self_attn_forward.1
= control target key start
LH: loop header
LB: loop body
LE: loop exit
PB: predicated region body
PF: predicated region fallthrough
CT: control target
= control target key end

     0   :  { %s2422_s17 = smov 0   ;;  %s2424_s18 = smov 0   ;;  %s3327_s0 = inlined_call_operand.<no memory space> [shape: f32[1,1], index: 0, kind: input, shape index: {}]   ;;  %s3328_s1 = inlined_call_operand.vmem [shape: f32[2,128,256], index: 1, kind: input, shape index: {}]   ;;  %s3329_s2 = inlined_call_operand.vmem [shape: bf16[160,128], index: 2, kind: input, shape index: {}]   ;;  %s3330_s3 = inlined_call_operand.vmem [shape: f32[160,1], index: 3, kind: input, shape index: {}]   ;;  %s3331_s4 = inlined_call_operand.vmem [shape: f32[2,128,256], index: 4, kind: output, shape index: {}]  }
   0x1   :  { %9 = sst [smem:[#allocation3]] %s3327_s0  ;;  %s2426_s19 = smov 0  }
   0x2 LB: > { %s27_s0 = sadd.s32 1, %s2387_s18  ;;  %p1993_p0 = scmp.ge.s32.totalorder %s2391_s19, 1  ;;  %s2391_s19 = sphi %s2426_s19, %s15_s19   ;;  %s2387_s18 = sphi %s2424_s18, %s3420_s18   ;;  %s2383_s17 = sphi %s2422_s17, %s3419_s17  }
   0x3   : > { %p29_p1 = scmp.ge.s32.totalorder %s27_s0, 2  ;;  %p177_p2 = scmp.lt.s32.totalorder %s2391_s19, 3 }
   0x5   : > { %s3422_s0 = smov (%p29_p1, %s27_s0), 0  ;;  %p178_p3 = pnand %p1993_p0, %p177_p2 }
   0x7   : > { %181 = sbr.rel (%p178_p3) target bundleno = 1365 (0x555), region = 36 }
   0xc   : > { %p207_p4 = scmp.lt.s32.totalorder %s2383_s17, 1  ;;  %v3332_v0 = vmov 0   ;;  %v295_v1 = vld [vmem:[%s3330_s3] sm:$0xff]  ;;  %v296_v2 = vld [vmem:[%s3330_s3 + $0x8] sm:$0xff]  ;;  %v297_v3 = vld [vmem:[%s3330_s3 + $0x10] sm:$0xff]  ;;  %vm825_vm0 = vcmask 130048  }
   0xd   : > { %507 = vmatprep.mubr.bf16.mxu0 %v3332_v0  ;;  %2165 = vset.pattern.permute.xlu0 %v3332_v0  ;;  %v298_v4 = vld [vmem:[%s3330_s3 + $0x18] sm:$0xff]  ;;  %v2167_v53 = vld [vmem:[%s3329_s2] sm:$0xff]   ;;  %v2168_v54 = vld [vmem:[%s3329_s2 + $0x8] sm:$0xff]   ;;  %s1806_s16 = sld [smem:[#allocation3]] }
   0xe   : > { %s3424_s17 = smov (!%p207_p4, %s2383_s17), 1  ;;  %317 = vperm.xlu0 %2165, %v295_v1   ;;  %2166 = vset.pattern.permute.xlu1 %v3332_v0 }
   0xf   : > { %906 = vmatprep.mubr.bf16.mxu1 %v3332_v0  ;;  %s2066_s26 = sshll.u32 %s3424_s17, 8  ;;  %327 = vperm.xlu1 %2166, %v297_v3  }
  0x10   : > { %s2464_s5 = scalar_lea.vmem %s3328_s1, %s2066_s26  ;;  %s3224_s22 = scalar_lea.vmem %s3331_s4, %s2066_s26 }
  0x11   : > { %v256_v5 = vld [vmem:[%s2464_s5 + $0xe8] sm:$0xff]  ;;  %v258_v6 = vld [vmem:[%s2464_s5 + $0xf8] sm:$0xff]  ;;  %v255_v7 = vld [vmem:[%s2464_s5 + $0xe0] sm:$0xff] }
  0x12   : > { %322 = vperm.xlu0 %2165, %v296_v2   ;;  %v274_v8 = vpack.c.bf16 %v258_v6, %v256_v5  ;;  %v257_v9 = vld [vmem:[%s2464_s5 + $0xf0] sm:$0xff]  ;;  %v252_v10 = vld [vmem:[%s2464_s5 + $0xc8] sm:$0xff]  ;;  %v254_v11 = vld [vmem:[%s2464_s5 + $0xd8] sm:$0xff] }
  0x13   : > { %v273_v12 = vpack.c.bf16 %v257_v9, %v255_v7  ;;  %v272_v13 = vpack.c.bf16 %v254_v11, %v252_v10  ;;  %v251_v14 = vld [vmem:[%s2464_s5 + $0xc0] sm:$0xff]  ;;  %v253_v15 = vld [vmem:[%s2464_s5 + $0xd0] sm:$0xff]  ;;  %v248_v16 = vld [vmem:[%s2464_s5 + $0xa8] sm:$0xff]  ;;  %332 = vperm.xlu1 %2166, %v298_v4  }
  0x14   : > { %475 = vmatprep.subr.bf16.mxu0 %v274_v8  ;;  %v250_v17 = vld [vmem:[%s2464_s5 + $0xb8] sm:$0xff]  ;;  %v271_v18 = vpack.c.bf16 %v253_v15, %v251_v14  ;;  %v247_v20 = vld [vmem:[%s2464_s5 + $0xa0] sm:$0xff]  ;;  %v249_v21 = vld [vmem:[%s2464_s5 + $0xb0] sm:$0xff] }
  0x15   : > { %476 = vmatpush1.bf16.msra.mxu0 %v273_v12  ;;  %v270_v19 = vpack.c.bf16 %v250_v17, %v248_v16  ;;  %v244_v22 = vld [vmem:[%s2464_s5 + $0x88] sm:$0xff]  ;;  %v246_v23 = vld [vmem:[%s2464_s5 + $0x98] sm:$0xff]  ;;  %v269_v24 = vpack.c.bf16 %v249_v21, %v247_v20  ;;  %v243_v26 = vld [vmem:[%s2464_s5 + $0x80] sm:$0xff] }
  0x16   : > { %477 = vmatprep.subr.bf16.mxu0 %v272_v13  ;;  %v268_v25 = vpack.c.bf16 %v246_v23, %v244_v22  ;;  %v245_v27 = vld [vmem:[%s2464_s5 + $0x90] sm:$0xff]  ;;  %v240_v28 = vld [vmem:[%s2464_s5 + $0x68] sm:$0xff]  ;;  %v242_v29 = vld [vmem:[%s2464_s5 + $0x78] sm:$0xff] }
  0x17   : > { %v239_v30 = vld [vmem:[%s2464_s5 + $0x60] sm:$0xff]  ;;  %v241_v31 = vld [vmem:[%s2464_s5 + $0x70] sm:$0xff]  ;;  %v267_v32 = vpack.c.bf16 %v245_v27, %v243_v26  ;;  %v266_v33 = vpack.c.bf16 %v242_v29, %v240_v28  ;;  %v236_v34 = vld [vmem:[%s2464_s5 + $0x48] sm:$0xff] }
  0x18   : > { %v238_v35 = vld [vmem:[%s2464_s5 + $0x58] sm:$0xff]  ;;  %v265_v36 = vpack.c.bf16 %v241_v31, %v239_v30  ;;  %v235_v38 = vld [vmem:[%s2464_s5 + $0x40] sm:$0xff]  ;;  %v237_v39 = vld [vmem:[%s2464_s5 + $0x50] sm:$0xff] }
  0x19   : > { %478 = vmatpush1.bf16.msra.mxu0 %v271_v18  ;;  %v264_v37 = vpack.c.bf16 %v238_v35, %v236_v34  ;;  %v232_v40 = vld [vmem:[%s2464_s5 + $0x28] sm:$0xff]  ;;  %v234_v41 = vld [vmem:[%s2464_s5 + $0x38] sm:$0xff]  ;;  %v263_v42 = vpack.c.bf16 %v237_v39, %v235_v38  ;;  %v231_v44 = vld [vmem:[%s2464_s5 + $0x20] sm:$0xff] }
  0x1a   : > { %479 = vmatprep.subr.bf16.mxu0 %v270_v19  ;;  %v262_v43 = vpack.c.bf16 %v234_v41, %v232_v40  ;;  %v233_v45 = vld [vmem:[%s2464_s5 + $0x30] sm:$0xff]  ;;  %v228_v46 = vld [vmem:[%s2464_s5 + $0x8] sm:$0xff]  ;;  %v230_v47 = vld [vmem:[%s2464_s5 + $0x18] sm:$0xff] }
  0x1b   : > { %v261_v48 = vpack.c.bf16 %v233_v45, %v231_v44  ;;  %v260_v49 = vpack.c.bf16 %v230_v47, %v228_v46  ;;  %v227_v50 = vld [vmem:[%s2464_s5] sm:$0xff]  ;;  %v229_v51 = vld [vmem:[%s2464_s5 + $0x10] sm:$0xff] }
  0x1c   : > { %v259_v52 = vpack.c.bf16 %v229_v51, %v227_v50 }
  0x1d   : > { %480 = vmatpush1.bf16.msra.mxu0 %v269_v24 }
  0x1e   : > { %481 = vmatprep.subr.bf16.mxu0 %v268_v25 }
  0x21   : > { %482 = vmatpush1.bf16.msra.mxu0 %v267_v32 }
  0x22   : > { %483 = vmatprep.subr.bf16.mxu0 %v266_v33 }
  0x25   : > { %484 = vmatpush1.bf16.msra.mxu0 %v265_v36 }
  0x26   : > { %485 = vmatprep.subr.bf16.mxu0 %v264_v37 }
  0x29   : > { %486 = vmatpush1.bf16.msra.mxu0 %v263_v42 }
  0x2a   : > { %487 = vmatprep.subr.bf16.mxu0 %v262_v43 }
  0x2d   : > { %488 = vmatpush1.bf16.msra.mxu0 %v261_v48 }
  0x2e   : > { %489 = vmatprep.subr.bf16.mxu0 %v260_v49 }
  0x31   : > { %490 = vmatpush1.bf16.msra.mxu0 %v259_v52 }
  0x34   : > { %508 = vmatmul.mubr.bf16.vlgmr.msra.gmra.mxu0 %v2167_v53 }
  0x35   : > { %517 = vmatprep.mubr.bf16.mxu0 %v3332_v0 }
  0x3c   : > { %518 = vmatmul.mubr.bf16.gmra.mxu0 %v2168_v54 }
  0x3d   : > { %527 = vmatprep.mubr.bf16.mxu0 %v3332_v0 }
  0x89   : > { %v318_v55 = vpop.permute.xlu0 %317 }
  0x8a   : > { %v328_v58 = vpop.permute.xlu1 %327 }
  0x8d   : > { %v323_v59 = vpop.permute.xlu0 %322 }
  0x8e   : > { %v333_v7 = vpop.permute.xlu1 %332 }
  0xf4   : > { %v509_v56 = vpop.f32.mrf.mxu0 }
  0xf5   : > { %v510_v61 = vadd.f32 %v509_v56, %v318_v55 }
  0xf6   : > { %v511_v57 = vpop.f32.mrf.mxu0 }
  0xf7   : > { %v512_v1 = vadd.f32 %v511_v57, %v318_v55 }
  0xf8   : > { %v513_v60 = vpop.f32.mrf.mxu0 }
  0xf9   : > { %v514_v62 = vadd.f32 %v513_v60, %v323_v59 }
  0xfa   : > { %v515_v63 = vpop.f32.mrf.mxu0 }
  0xfb   : > { %v2088_v2 = vpack.c.bf16 %v514_v62, %v510_v61  ;;  %v516_v3 = vadd.f32 %v515_v63, %v323_v59 }
  0xfc   : > { %v519_v4 = vpop.f32.mrf.mxu0 }
  0xfd   : > { %v2089_v5 = vpack.c.bf16 %v516_v3, %v512_v1  ;;  %783 = vxpose.xlu0.c.b16.start.end [1/1] (short) %v2088_v2, 128  ;;  %v520_v9 = vadd.f32 %v519_v4, %v328_v58 }
  0xfe   : > { %v521_v6 = vpop.f32.mrf.mxu0 }
  0xff   : > { %799 = vxpose.xlu1.c.b16.start.end [1/1] (short) %v2089_v5, 128  ;;  %v522_v10 = vadd.f32 %v521_v6, %v328_v58 }
 0x100   : > { %v523_v8 = vpop.f32.mrf.mxu0 }
 0x101   : > { %v524_v11 = vadd.f32 %v523_v8, %v333_v7 }
 0x102   : > { %v525_v12 = vpop.f32.mrf.mxu0 }
 0x103   : > { %v526_v13 = vadd.f32 %v525_v12, %v333_v7  ;;  %v2090_v14 = vpack.c.bf16 %v524_v11, %v520_v9 }
 0x105   : > { %v2091_v15 = vpack.c.bf16 %v526_v13, %v522_v10 }
 0x107   : > { %888 = vmatprep.subr.bf16.mxu1 %v2091_v15 }
 0x108   : > { %889 = vmatpush1.bf16.msra.mxu1 %v2090_v14 }
 0x15f   : > { %v791_v16 = vpop.trf.xlu0 }
 0x160   : > { %2032 = vmatmul.mubr.msk.bf16.vlgmr.msra.gmra.mxu1 %vm825_vm0, %v791_v16 }
 0x161   : > { %916 = vmatprep.mubr.bf16.mxu1 %v3332_v0  ;;  %v807_v24 = vpop.trf.xlu1 }
 0x163   : > { %v792_v17 = vpop.trf.xlu0 }
 0x165   : > { %v808_v25 = vpop.trf.xlu1 }
 0x167   : > { %v793_v18 = vpop.trf.xlu0 }
 0x168   : > { %2033 = vmatmul.mubr.msk.bf16.gmra.mxu1 %vm825_vm0, %v792_v17 }
 0x169   : > { %926 = vmatprep.mubr.bf16.mxu1 %v3332_v0  ;;  %v809_v26 = vpop.trf.xlu1 }
 0x16b   : > { %v794_v19 = vpop.trf.xlu0 }
 0x16d   : > { %v810_v27 = vpop.trf.xlu1 }
 0x16f   : > { %v795_v20 = vpop.trf.xlu0 }
 0x170   : > { %2034 = vmatmul.mubr.msk.bf16.gmra.mxu1 %vm825_vm0, %v793_v18 }
 0x171   : > { %936 = vmatprep.mubr.bf16.mxu1 %v3332_v0  ;;  %v811_v28 = vpop.trf.xlu1 }
 0x173   : > { %v796_v21 = vpop.trf.xlu0 }
 0x175   : > { %v812_v29 = vpop.trf.xlu1 }
 0x177   : > { %v797_v22 = vpop.trf.xlu0 }
 0x178   : > { %2035 = vmatmul.mubr.msk.bf16.gmra.mxu1 %vm825_vm0, %v794_v19 }
 0x179   : > { %946 = vmatprep.mubr.bf16.mxu1 %v3332_v0  ;;  %v813_v30 = vpop.trf.xlu1 }
 0x17b   : > { %v798_v23 = vpop.trf.xlu0 }
 0x17d   : > { %v814_v31 = vpop.trf.xlu1 }
 0x180   : > { %2036 = vmatmul.mubr.msk.bf16.gmra.mxu1 %vm825_vm0, %v795_v20 }
 0x181   : > { %956 = vmatprep.mubr.bf16.mxu1 %v3332_v0 }
 0x188   : > { %2037 = vmatmul.mubr.msk.bf16.gmra.mxu1 %vm825_vm0, %v796_v21 }
 0x189   : > { %966 = vmatprep.mubr.bf16.mxu1 %v3332_v0 }
 0x190   : > { %2038 = vmatmul.mubr.msk.bf16.gmra.mxu1 %vm825_vm0, %v797_v22 }
 0x191   : > { %976 = vmatprep.mubr.bf16.mxu1 %v3332_v0 }
 0x198   : > { %2039 = vmatmul.mubr.msk.bf16.gmra.mxu1 %vm825_vm0, %v798_v23 }
 0x199   : > { %986 = vmatprep.mubr.bf16.mxu1 %v3332_v0 }
 0x1a0   : > { %2040 = vmatmul.mubr.msk.bf16.gmra.mxu1 %vm825_vm0, %v807_v24 }
 0x1a1   : > { %996 = vmatprep.mubr.bf16.mxu1 %v3332_v0 }
 0x1a8   : > { %2041 = vmatmul.mubr.msk.bf16.gmra.mxu1 %vm825_vm0, %v808_v25 }
 0x1a9   : > { %1006 = vmatprep.mubr.bf16.mxu1 %v3332_v0 }
 0x1b0   : > { %2042 = vmatmul.mubr.msk.bf16.gmra.mxu1 %vm825_vm0, %v809_v26 }
 0x1b1   : > { %1016 = vmatprep.mubr.bf16.mxu1 %v3332_v0 }
 0x1b8   : > { %2043 = vmatmul.mubr.msk.bf16.gmra.mxu1 %vm825_vm0, %v810_v27 }
 0x1b9   : > { %1026 = vmatprep.mubr.bf16.mxu1 %v3332_v0 }
 0x1c0   : > { %2044 = vmatmul.mubr.msk.bf16.gmra.mxu1 %vm825_vm0, %v811_v28 }
 0x1c1   : > { %1036 = vmatprep.mubr.bf16.mxu1 %v3332_v0 }
 0x1c8   : > { %2045 = vmatmul.mubr.msk.bf16.gmra.mxu1 %vm825_vm0, %v812_v29 }
 0x1c9   : > { %1046 = vmatprep.mubr.bf16.mxu1 %v3332_v0 }
 0x1d0   : > { %2046 = vmatmul.mubr.msk.bf16.gmra.mxu1 %vm825_vm0, %v813_v30 }
 0x1d1   : > { %1056 = vmatprep.mubr.bf16.mxu1 %v3332_v0 }
 0x1d8   : > { %2047 = vmatmul.mubr.msk.bf16.gmra.mxu1 %vm825_vm0, %v814_v31 }
 0x220   : > { %v2537_v32 = vpop.f32.mrf.mxu1 }
 0x222   : > { %v2539_v33 = vpop.f32.mrf.mxu1 }
 0x223   : > { %v1067_v27 = vmax.f32 %v2537_v32, %v2539_v33 }
 0x224   : > { %v2541_v34 = vpop.f32.mrf.mxu1 }
 0x226   : > { %v2543_v35 = vpop.f32.mrf.mxu1 }
 0x227   : > { %v1070_v30 = vmax.f32 %v2541_v34, %v2543_v35 }
 0x228   : > { %v2545_v36 = vpop.f32.mrf.mxu1 }
 0x22a   : > { %v2547_v37 = vpop.f32.mrf.mxu1 }
 0x22b   : > { %v1073_v23 = vmax.f32 %v2545_v36, %v2547_v37 }
 0x22c   : > { %v2549_v38 = vpop.f32.mrf.mxu1 }
 0x22e   : > { %v2551_v39 = vpop.f32.mrf.mxu1 }
 0x22f   : > { %v1076_v26 = vmax.f32 %v2549_v38, %v2551_v39 }
 0x230   : > { %v2553_v40 = vpop.f32.mrf.mxu1 }
 0x232   : > { %v2555_v41 = vpop.f32.mrf.mxu1 }
 0x233   : > { %v1079_v19 = vmax.f32 %v2553_v40, %v2555_v41 }
 0x234   : > { %v2557_v42 = vpop.f32.mrf.mxu1 }
 0x236   : > { %v2559_v43 = vpop.f32.mrf.mxu1 }
 0x237   : > { %v1082_v22 = vmax.f32 %v2557_v42, %v2559_v43 }
 0x238   : > { %v2561_v44 = vpop.f32.mrf.mxu1 }
 0x23a   : > { %v2563_v45 = vpop.f32.mrf.mxu1 }
 0x23b   : > { %v1085_v15 = vmax.f32 %v2561_v44, %v2563_v45 }
 0x23c   : > { %v2565_v46 = vpop.f32.mrf.mxu1 }
 0x23e   : > { %v2567_v47 = vpop.f32.mrf.mxu1 }
 0x23f   : > { %v1088_v18 = vmax.f32 %v2565_v46, %v2567_v47 }
 0x240   : > { %v2569_v48 = vpop.f32.mrf.mxu1 }
 0x242   : > { %v2571_v49 = vpop.f32.mrf.mxu1 }
 0x243   : > { %v1091_v11 = vmax.f32 %v2569_v48, %v2571_v49 }
 0x244   : > { %v2573_v50 = vpop.f32.mrf.mxu1 }
 0x246   : > { %v2575_v51 = vpop.f32.mrf.mxu1 }
 0x247   : > { %v1094_v14 = vmax.f32 %v2573_v50, %v2575_v51 }
 0x248   : > { %v2577_v52 = vpop.f32.mrf.mxu1 }
 0x24a   : > { %v2579_v53 = vpop.f32.mrf.mxu1 }
 0x24b   : > { %v1097_v7 = vmax.f32 %v2577_v52, %v2579_v53 }
 0x24c   : > { %v2581_v54 = vpop.f32.mrf.mxu1 }
 0x24e   : > { %v2583_v55 = vpop.f32.mrf.mxu1 }
 0x24f   : > { %v1100_v10 = vmax.f32 %v2581_v54, %v2583_v55 }
 0x250   : > { %v2585_v56 = vpop.f32.mrf.mxu1 }
 0x252   : > { %v2587_v57 = vpop.f32.mrf.mxu1 }
 0x253   : > { %v1103_v2 = vmax.f32 %v2585_v56, %v2587_v57 }
 0x254   : > { %v2589_v58 = vpop.f32.mrf.mxu1 }
 0x256   : > { %v2591_v59 = vpop.f32.mrf.mxu1 }
 0x257   : > { %v1106_v6 = vmax.f32 %v2589_v58, %v2591_v59 }
 0x258   : > { %v2593_v60 = vpop.f32.mrf.mxu1 }
 0x25a   : > { %v2595_v61 = vpop.f32.mrf.mxu1 }
 0x25b   : > { %v1109_v62 = vmax.f32 %v2593_v60, %v2595_v61 }
 0x25c   : > { %v2599_v63 = vpop.f32.mrf.mxu1 }
 0x25d   : > { %1110 = vmax.xlane.f32.xlu0 %v1109_v62 }
 0x25e   : > { %v2601_v1 = vpop.f32.mrf.mxu1 }
 0x25f   : > { %v1112_v3 = vmax.f32 %v2599_v63, %v2601_v1 }
 0x260   : > { %v2607_v4 = vpop.f32.mrf.mxu1 }
 0x261   : > { %3362 = vst [vmem:[#allocation4_spill] sm:$0xff] %v2607_v4  ;;  %1104 = vmax.xlane.f32.xlu0 %v1103_v2  ;;  %1113 = vmax.xlane.f32.xlu1 %v1112_v3 }
 0x262   : > { %v2609_v5 = vpop.f32.mrf.mxu1 }
 0x263   : > { %3363 = vst [vmem:[#allocation5_spill] sm:$0xff] %v2609_v5 }
 0x264   : > { %v2615_v8 = vpop.f32.mrf.mxu1 }
 0x265   : > { %3364 = vst [vmem:[#allocation6_spill] sm:$0xff] %v2615_v8  ;;  %1107 = vmax.xlane.f32.xlu0 %v1106_v6  ;;  %1098 = vmax.xlane.f32.xlu1 %v1097_v7 }
 0x266   : > { %v2617_v9 = vpop.f32.mrf.mxu1 }
 0x267   : > { %3365 = vst [vmem:[#allocation7_spill] sm:$0xff] %v2617_v9 }
 0x268   : > { %v2623_v12 = vpop.f32.mrf.mxu1 }
 0x269   : > { %1101 = vmax.xlane.f32.xlu0 %v1100_v10  ;;  %1092 = vmax.xlane.f32.xlu1 %v1091_v11 }
 0x26a   : > { %v2625_v13 = vpop.f32.mrf.mxu1 }
 0x26c   : > { %v2631_v16 = vpop.f32.mrf.mxu1 }
 0x26d   : > { %3366 = vst [vmem:[#allocation8_spill] sm:$0xff] %v2631_v16  ;;  %1095 = vmax.xlane.f32.xlu0 %v1094_v14  ;;  %1086 = vmax.xlane.f32.xlu1 %v1085_v15 }
 0x26e   : > { %v2633_v17 = vpop.f32.mrf.mxu1 }
 0x270   : > { %v2639_v20 = vpop.f32.mrf.mxu1 }
 0x271   : > { %1089 = vmax.xlane.f32.xlu0 %v1088_v18  ;;  %1080 = vmax.xlane.f32.xlu1 %v1079_v19 }
 0x272   : > { %v2641_v21 = vpop.f32.mrf.mxu1 }
 0x274   : > { %v2647_v24 = vpop.f32.mrf.mxu1 }
 0x275   : > { %1083 = vmax.xlane.f32.xlu0 %v1082_v22  ;;  %1074 = vmax.xlane.f32.xlu1 %v1073_v23 }
 0x276   : > { %v2649_v25 = vpop.f32.mrf.mxu1 }
 0x278   : > { %v2655_v28 = vpop.f32.mrf.mxu1 }
 0x279   : > { %1077 = vmax.xlane.f32.xlu0 %v1076_v26  ;;  %1068 = vmax.xlane.f32.xlu1 %v1067_v27 }
 0x27a   : > { %v2657_v29 = vpop.f32.mrf.mxu1 }
 0x27c   : > { %v2661_v31 = vpop.f32.mrf.mxu1 }
 0x27d   : > { %1071 = vmax.xlane.f32.xlu0 %v1070_v30 }
 0x27e   : > { %v2663_v62 = vpop.f32.mrf.mxu1 }
 0x280   : > { %v2665_v2 = vpop.f32.mrf.mxu1 }
 0x281   : > { %3367 = vst [vmem:[#allocation9_spill] sm:$0xff] %v2665_v2 }
 0x282   : > { %v2667_v3 = vpop.f32.mrf.mxu1 }
 0x283   : > { %3368 = vst [vmem:[#allocation10_spill] sm:$0xff] %v2667_v3 }
 0x284   : > { %v2669_v6 = vpop.f32.mrf.mxu1 }
 0x285   : > { %3369 = vst [vmem:[#allocation11_spill] sm:$0xff] %v2669_v6 }
 0x286   : > { %v2671_v7 = vpop.f32.mrf.mxu1 }
 0x287   : > { %3370 = vst [vmem:[#allocation12_spill] sm:$0xff] %v2671_v7 }
 0x288   : > { %v2673_v10 = vpop.f32.mrf.mxu1 }
 0x28a   : > { %v2675_v11 = vpop.f32.mrf.mxu1 }
 0x28b   : > { %v1145_v5 = vmax.f32 %v2673_v10, %v2675_v11 }
 0x28c   : > { %v2677_v14 = vpop.f32.mrf.mxu1 }
 0x28d   : > { %3371 = vst [vmem:[#allocation13_spill] sm:$0xff] %v2677_v14 }
 0x28e   : > { %v2679_v15 = vpop.f32.mrf.mxu1 }
 0x28f   : > { %3372 = vst [vmem:[#allocation14_spill] sm:$0xff] %v2679_v15 }
 0x290   : > { %v2681_v18 = vpop.f32.mrf.mxu1 }
 0x292   : > { %v2683_v19 = vpop.f32.mrf.mxu1 }
 0x293   : > { %3373 = vst [vmem:[#allocation15_spill] sm:$0xff] %v2683_v19  ;;  %v1151_v8 = vmax.f32 %v2681_v18, %v2683_v19  ;;  %v1148_v19 = vmax.f32 %v2677_v14, %v2679_v15 }
 0x294   : > { %v2685_v22 = vpop.f32.mrf.mxu1 }
 0x295   : > { %3374 = vst [vmem:[#allocation16_spill] sm:$0xff] %v2685_v22 }
 0x296   : > { %v2687_v23 = vpop.f32.mrf.mxu1 }
 0x297   : > { %3375 = vst [vmem:[#allocation17_spill] sm:$0xff] %v2687_v23  ;;  %v1154_v16 = vmax.f32 %v2685_v22, %v2687_v23  ;;  %v3376_v23 = vmov 0  }
 0x298   : > { %v2689_v26 = vpop.f32.mrf.mxu1 }
 0x29a   : > { %v2691_v27 = vpop.f32.mrf.mxu1 }
 0x29b   : > { %v1157_v30 = vmax.f32 %v2689_v26, %v2691_v27 }
 0x29c   : > { %v2695_v0 = vpop.f32.mrf.mxu1 }
 0x29d   : > { %1158 = vmax.xlane.f32.xlu1 %v1157_v30  ;;  %v1139_v30 = vmax.f32 %v2665_v2, %v2667_v3 }
 0x29e   : > { %v2699_v9 = vpop.f32.mrf.mxu1 }
 0x29f   : > { %v1160_v4 = vmax.f32 %v2695_v0, %v2699_v9 }
 0x2a1   : > { %1152 = vmax.xlane.f32.xlu1 %v1151_v8  ;;  %1161 = vmax.xlane.f32.xlu0 %v1160_v4  ;;  %v1142_v8 = vmax.f32 %v2669_v6, %v2671_v7  ;;  %v2169_v4 = vld [vmem:[%s3329_s2 + $0x10] sm:$0xff]  }
 0x2a2   : > { %528 = vmatmul.mubr.bf16.gmra.mxu0 %v2169_v4 }
 0x2a3   : > { %537 = vmatprep.mubr.bf16.mxu0 %v3376_v23 }
 0x2a5   : > { %1146 = vmax.xlane.f32.xlu1 %v1145_v5  ;;  %1155 = vmax.xlane.f32.xlu0 %v1154_v16  ;;  %v2170_v5 = vld [vmem:[%s3329_s2 + $0x18] sm:$0xff]   ;;  %v2171_v16 = vld [vmem:[%s3329_s2 + $0x20] sm:$0xff]  }
 0x2a9   : > { %1140 = vmax.xlane.f32.xlu1 %v1139_v30  ;;  %1149 = vmax.xlane.f32.xlu0 %v1148_v19  ;;  %v2172_v19 = vld [vmem:[%s3329_s2 + $0x28] sm:$0xff]  }
 0x2aa   : > { %538 = vmatmul.mubr.bf16.gmra.mxu0 %v2170_v5 }
 0x2ab   : > { %547 = vmatprep.mubr.bf16.mxu0 %v3376_v23 }
 0x2ad   : > { %1143 = vmax.xlane.f32.xlu0 %v1142_v8 }
 0x2b2   : > { %548 = vmatmul.mubr.bf16.gmra.mxu0 %v2171_v16 }
 0x2b3   : > { %557 = vmatprep.mubr.bf16.mxu0 %v3376_v23 }
 0x2ba   : > { %558 = vmatmul.mubr.bf16.gmra.mxu0 %v2172_v19 }
 0x2bb   : > { %567 = vmatprep.mubr.bf16.mxu0 %v3376_v23 }
 0x2e6   : > { %v1111_v30 = vpop.xlane.xlu0 %1110 }
 0x2e7   : > { %v1191_v8 = vsub.f32 %v2593_v60, %v1111_v30  ;;  %v1192_v4 = vsub.f32 %v2595_v61, %v1111_v30  ;;  %v2173_v60 = vld [vmem:[%s3329_s2 + $0x30] sm:$0xff]  }
 0x2e8   : > { %568 = vmatmul.mubr.bf16.gmra.mxu0 %v2173_v60 }
 0x2e9   : > { %v1283_v5 = vmul.f32 1.442695, %v1191_v8  ;;  %v1285_v7 = vmul.f32 1.442695, %v1192_v4  ;;  %577 = vmatprep.mubr.bf16.mxu0 %v3376_v23 }
 0x2ea   : > { %v1105_v6 = vpop.xlane.xlu0 %1104  ;;  %v1114_v15 = vpop.xlane.xlu1 %1113 }
 0x2eb   : > { %2177 = vpow2.f32 %v1283_v5  ;;  %v1187_v16 = vsub.f32 %v2585_v56, %v1105_v6  ;;  %v1188_v14 = vsub.f32 %v2587_v57, %v1105_v6  ;;  %v1193_v3 = vsub.f32 %v2599_v63, %v1114_v15 }
 0x2ec   : > { %2179 = vpow2.f32 %v1285_v7  ;;  %v1194_v2 = vsub.f32 %v2601_v1, %v1114_v15 }
 0x2ed   : > { %v1275_v61 = vmul.f32 1.442695, %v1187_v16  ;;  %v1277_v19 = vmul.f32 1.442695, %v1188_v14  ;;  %v1287_v30 = vmul.f32 1.442695, %v1193_v3 }
 0x2ee   : > { %v1289_v8 = vmul.f32 1.442695, %v1194_v2  ;;  %v1108_v4 = vpop.xlane.xlu0 %1107  ;;  %v1099_v22 = vpop.xlane.xlu1 %1098 }
 0x2ef   : > { %2181 = vpow2.f32 %v1275_v61  ;;  %v1189_v56 = vsub.f32 %v2589_v58, %v1108_v4  ;;  %v1190_v57 = vsub.f32 %v2591_v59, %v1108_v4  ;;  %v1183_v63 = vsub.f32 %v2577_v52, %v1099_v22 }
 0x2f0   : > { %2183 = vpow2.f32 %v1277_v19  ;;  %v1184_v1 = vsub.f32 %v2579_v53, %v1099_v22 }
 0x2f1   : > { %2185 = vpow2.f32 %v1287_v30  ;;  %v1279_v2 = vmul.f32 1.442695, %v1189_v56  ;;  %v1281_v7 = vmul.f32 1.442695, %v1190_v57  ;;  %v1267_v14 = vmul.f32 1.442695, %v1183_v63 }
 0x2f2   : > { %2187 = vpow2.f32 %v1289_v8  ;;  %v1102_v6 = vpop.xlane.xlu0 %1101  ;;  %v1093_v3 = vpop.xlane.xlu1 %1092  ;;  %v1269_v15 = vmul.f32 1.442695, %v1184_v1 }
 0x2f3   : > { %2189 = vpow2.f32 %v1279_v2  ;;  %v1185_v58 = vsub.f32 %v2581_v54, %v1102_v6  ;;  %v1186_v59 = vsub.f32 %v2583_v55, %v1102_v6  ;;  %v1179_v53 = vsub.f32 %v2569_v48, %v1093_v3 }
 0x2f4   : > { %2191 = vpow2.f32 %v1281_v7  ;;  %v1180_v22 = vsub.f32 %v2571_v49, %v1093_v3  ;;  %v1133_v48 = vmax.f32 %v2655_v28, %v2657_v29 }
 0x2f5   : > { %2193 = vpow2.f32 %v1267_v14  ;;  %v1271_v19 = vmul.f32 1.442695, %v1185_v58  ;;  %v1273_v30 = vmul.f32 1.442695, %v1186_v59  ;;  %v1259_v55 = vmul.f32 1.442695, %v1179_v53 }
 0x2f6   : > { %v1096_v52 = vpop.xlane.xlu0 %1095  ;;  %v1087_v16 = vpop.xlane.xlu1 %1086  ;;  %2195 = vpow2.f32 %v1269_v15  ;;  %v1261_v56 = vmul.f32 1.442695, %v1180_v22 }
 0x2f7   : > { %2197 = vpow2.f32 %v1271_v19  ;;  %v1181_v1 = vsub.f32 %v2573_v50, %v1096_v52  ;;  %v1182_v6 = vsub.f32 %v2575_v51, %v1096_v52  ;;  %v1175_v2 = vsub.f32 %v2561_v44, %v1087_v16 }
 0x2f8   : > { %v2744_v5 = vpop.eup %2177  ;;  %2199 = vpow2.f32 %v1273_v30  ;;  %v1176_v7 = vsub.f32 %v2563_v45, %v1087_v16  ;;  %v1136_v52 = vmax.f32 %v2661_v31, %v2663_v62  ;;  %v1127_v19 = vmax.f32 %v2639_v20, %v2641_v21 }
 0x2f9   : > { %v2747_v60 = vpop.eup %2179  ;;  %2201 = vpow2.f32 %v1259_v55  ;;  %v1263_v15 = vmul.f32 1.442695, %v1181_v1  ;;  %v1265_v50 = vmul.f32 1.442695, %v1182_v6  ;;  %v1251_v44 = vmul.f32 1.442695, %v1175_v2 }
 0x2fa   : > { %v1397_v61 = vadd.f32 %v2747_v60, %v2744_v5  ;;  %v1090_v57 = vpop.xlane.xlu0 %1089  ;;  %v1081_v63 = vpop.xlane.xlu1 %1080  ;;  %2203 = vpow2.f32 %v1261_v56  ;;  %v1253_v16 = vmul.f32 1.442695, %v1176_v7 }
 0x2fb   : > { %v1171_v22 = vsub.f32 %v2553_v40, %v1081_v63  ;;  %2205 = vpow2.f32 %v1263_v15  ;;  %v1177_v55 = vsub.f32 %v2565_v46, %v1090_v57  ;;  %v1178_v56 = vsub.f32 %v2567_v47, %v1090_v57 }
 0x2fc   : > { %v2753_v54 = vpop.eup %2181  ;;  %1398 = vadd.xlane.f32.xlu1 %v1397_v61  ;;  %v1172_v61 = vsub.f32 %v2555_v41, %v1081_v63  ;;  %2207 = vpow2.f32 %v1265_v50 }
 0x2fd   : > { %v2755_v8 = vpop.eup %2183  ;;  %2209 = vpow2.f32 %v1251_v44  ;;  %v1255_v2 = vmul.f32 1.442695, %v1177_v55  ;;  %v1257_v7 = vmul.f32 1.442695, %v1178_v56 }
 0x2fe   : > { %v2757_v4 = vpop.eup %2185  ;;  %v1391_v14 = vadd.f32 %v2755_v8, %v2753_v54  ;;  %v1084_v59 = vpop.xlane.xlu0 %1083  ;;  %2211 = vpow2.f32 %v1253_v16  ;;  %v1245_v63 = vmul.f32 1.442695, %v1172_v61 }
 0x2ff   : > { %v2761_v49 = vpop.eup %2187  ;;  %v1075_v51 = vpop.xlane.xlu1 %1074  ;;  %v1173_v47 = vsub.f32 %v2557_v42, %v1084_v59 }
 0x300   : > { %1134 = vmax.xlane.f32.xlu1 %v1133_v48  ;;  %v1400_v3 = vadd.f32 %v2761_v49, %v2757_v4  ;;  %v2771_v58 = vpop.eup %2189  ;;  %v1243_v48 = vmul.f32 1.442695, %v1171_v22  ;;  %v1167_v41 = vsub.f32 %v2545_v36, %v1075_v51  ;;  %v1168_v1 = vsub.f32 %v2547_v37, %v1075_v51  ;;  %v2174_v51 = vld [vmem:[%s3329_s2 + $0x38] sm:$0xff]  }
 0x301   : > { %v2775_v53 = vpop.eup %2191  ;;  %v1130_v36 = vmax.f32 %v2647_v24, %v2649_v25  ;;  %v1247_v22 = vmul.f32 1.442695, %v1173_v47  ;;  %578 = vmatmul.mubr.bf16.gmra.mxu0 %v2174_v51  ;;  %v3379_v47 = vld [vmem:[#allocation4_spill] sm:$0xff] }
 0x302   : > { %1401 = vadd.xlane.f32.xlu0 %v1400_v3  ;;  %v2778_v45 = vpop.eup %2193  ;;  %v1394_v40 = vadd.f32 %v2775_v53, %v2771_v58  ;;  %v1078_v6 = vpop.xlane.xlu0 %1077  ;;  %2213 = vpow2.f32 %v1243_v48  ;;  %v1235_v37 = vmul.f32 1.442695, %v1167_v41  ;;  %587 = vmatprep.mubr.bf16.mxu0 %v3376_v23 }
 0x303   : > { %v2783_v30 = vpop.eup %2195  ;;  %v1069_v3 = vpop.xlane.xlu1 %1068  ;;  %2215 = vpow2.f32 %v1245_v63  ;;  %v1170_v61 = vsub.f32 %v2551_v39, %v1078_v6 }
 0x304   : > { %1392 = vadd.xlane.f32.xlu1 %v1391_v14  ;;  %v1385_v46 = vadd.f32 %v2783_v30, %v2778_v45  ;;  %v2794_v57 = vpop.eup %2197  ;;  %v1174_v14 = vsub.f32 %v2559_v43, %v1084_v59  ;;  %v1163_v50 = vsub.f32 %v2537_v32, %v1069_v3  ;;  %v1164_v43 = vsub.f32 %v2539_v33, %v1069_v3 }
 0x305   : > { %v2799_v15 = vpop.eup %2199  ;;  %v1121_v59 = vmax.f32 %v2623_v12, %v2625_v13  ;;  %2217 = vpow2.f32 %v1255_v2  ;;  %v1169_v32 = vsub.f32 %v2549_v38, %v1078_v6  ;;  %v1241_v41 = vmul.f32 1.442695, %v1170_v61  ;;  %v3378_v2 = vld [vmem:[#allocation5_spill] sm:$0xff] }
 0x306   : > { %1137 = vmax.xlane.f32.xlu0 %v1136_v52  ;;  %v2805_v42 = vpop.eup %2201  ;;  %v1237_v52 = vmul.f32 1.442695, %v1168_v1  ;;  %2219 = vpow2.f32 %v1257_v7  ;;  %v1249_v16 = vmul.f32 1.442695, %v1174_v14  ;;  %v1388_v33 = vadd.f32 %v2799_v15, %v2794_v57  ;;  %v3377_v1 = vld [vmem:[#allocation8_spill] sm:$0xff] }
 0x307   : > { %v2810_v44 = vpop.eup %2203  ;;  %2221 = vpow2.f32 %v1235_v37  ;;  %v1227_v55 = vmul.f32 1.442695, %v1163_v50  ;;  %v1229_v56 = vmul.f32 1.442695, %v1164_v43  ;;  %v1124_v6 = vmax.f32 %v3377_v1, %v2633_v17  ;;  %v2175_v37 = vld [vmem:[%s3329_s2 + $0x40] sm:$0xff]  }
 0x308   : > { %1128 = vmax.xlane.f32.xlu1 %v1127_v19  ;;  %v1072_v19 = vpop.xlane.xlu0 %1071  ;;  %2223 = vpow2.f32 %v1237_v52  ;;  %v1379_v38 = vadd.f32 %v2810_v44, %v2805_v42  ;;  %v2820_v39 = vpop.eup %2205 }
 0x309   : > { %2225 = vpow2.f32 %v1247_v22  ;;  %v1165_v48 = vsub.f32 %v2541_v34, %v1072_v19  ;;  %v1166_v63 = vsub.f32 %v2543_v35, %v1072_v19  ;;  %v2825_v3 = vpop.eup %2207  ;;  %v1115_v34 = vmax.f32 %v3379_v47, %v3378_v2  ;;  %588 = vmatmul.mubr.bf16.gmra.mxu0 %v2175_v37  ;;  %v3381_v22 = vld [vmem:[#allocation6_spill] sm:$0xff] }
 0x30a   : > { %1395 = vadd.xlane.f32.xlu0 %v1394_v40  ;;  %v1239_v40 = vmul.f32 1.442695, %v1169_v32  ;;  %2227 = vpow2.f32 %v1249_v16  ;;  %597 = vmatprep.mubr.bf16.mxu0 %v3376_v23 }
 0x30b   : > { %2229 = vpow2.f32 %v1227_v55  ;;  %v1231_v14 = vmul.f32 1.442695, %v1165_v48  ;;  %v1233_v35 = vmul.f32 1.442695, %v1166_v63 }
 0x30c   : > { %1386 = vadd.xlane.f32.xlu1 %v1385_v46  ;;  %v2827_v46 = vpop.eup %2209  ;;  %2231 = vpow2.f32 %v1229_v56  ;;  %v2176_v56 = vld [vmem:[%s3329_s2 + $0x48] sm:$0xff]  }
 0x30d   : > { %v2831_v7 = vpop.eup %2211  ;;  %2233 = vpow2.f32 %v1239_v40 }
 0x30e   : > { %1131 = vmax.xlane.f32.xlu0 %v1130_v36  ;;  %2235 = vpow2.f32 %v1241_v41  ;;  %v1382_v36 = vadd.f32 %v2825_v3, %v2820_v39  ;;  %v1373_v51 = vadd.f32 %v2831_v7, %v2827_v46 }
 0x30f   : > { %v2838_v50 = vpop.eup %2213  ;;  %2237 = vpow2.f32 %v1231_v14 }
 0x310   : > { %1122 = vmax.xlane.f32.xlu1 %v1121_v59  ;;  %v2842_v52 = vpop.eup %2215  ;;  %2239 = vpow2.f32 %v1233_v35  ;;  %v3380_v59 = vld [vmem:[#allocation7_spill] sm:$0xff] }
 0x311   : > { %v1118_v32 = vmax.f32 %v3381_v22, %v3380_v59  ;;  %v1367_v19 = vadd.f32 %v2842_v52, %v2838_v50  ;;  %598 = vmatmul.mubr.bf16.gmra.mxu0 %v2176_v56 }
 0x312   : > { %1389 = vadd.xlane.f32.xlu0 %v1388_v33  ;;  %v2845_v43 = vpop.eup %2217 }
 0x313   : > { %v2849_v16 = vpop.eup %2219 }
 0x314   : > { %1380 = vadd.xlane.f32.xlu1 %v1379_v38  ;;  %v2851_v61 = vpop.eup %2221  ;;  %v1376_v23 = vadd.f32 %v2849_v16, %v2845_v43 }
 0x315   : > { %3382 = vst [vmem:[#allocation8_spill] sm:$0xff] %v2851_v61  ;;  %v2855_v33 = vpop.eup %2223 }
 0x316   : > { %1125 = vmax.xlane.f32.xlu0 %v1124_v6  ;;  %3383 = vst [vmem:[#allocation5_spill] sm:$0xff] %v2855_v33  ;;  %v2857_v55 = vpop.eup %2225  ;;  %v1361_v48 = vadd.f32 %v2855_v33, %v2851_v61 }
 0x317   : > { %v2864_v38 = vpop.eup %2227 }
 0x318   : > { %1116 = vmax.xlane.f32.xlu1 %v1115_v34  ;;  %v2866_v40 = vpop.eup %2229  ;;  %v1370_v6 = vadd.f32 %v2864_v38, %v2857_v55 }
 0x319   : > { %3384 = vst [vmem:[#allocation4_spill] sm:$0xff] %v2866_v40  ;;  %v2870_v41 = vpop.eup %2231 }
 0x31a   : > { %1383 = vadd.xlane.f32.xlu0 %v1382_v36  ;;  %3385 = vst [vmem:[#allocation7_spill] sm:$0xff] %v2870_v41  ;;  %v2872_v63 = vpop.eup %2233  ;;  %v1355_v35 = vadd.f32 %v2870_v41, %v2866_v40  ;;  %v3389_v41 = vld [vmem:[#allocation15_spill] sm:$0xff] }
 0x31b   : > { %3386 = vst [vmem:[#allocation6_spill] sm:$0xff] %v2872_v63  ;;  %v2876_v34 = vpop.eup %2235 }
 0x31c   : > { %1374 = vadd.xlane.f32.xlu1 %v1373_v51  ;;  %v2882_v51 = vpop.eup %2237 }
 0x31d   : > { %3387 = vst [vmem:[#allocation18_spill] sm:$0xff] %v2882_v51 }
 0x31e   : > { %1119 = vmax.xlane.f32.xlu0 %v1118_v32  ;;  %v1364_v32 = vadd.f32 %v2876_v34, %v2872_v63 }
 0x320   : > { %1368 = vadd.xlane.f32.xlu1 %v1367_v19  ;;  %v2886_v19 = vpop.eup %2239 }
 0x321   : > { %3388 = vst [vmem:[#allocation19_spill] sm:$0xff] %v2886_v19 }
 0x322   : > { %1377 = vadd.xlane.f32.xlu0 %v1376_v23 }
 0x324   : > { %1362 = vadd.xlane.f32.xlu1 %v1361_v48 }
 0x326   : > { %1371 = vadd.xlane.f32.xlu0 %v1370_v6  ;;  %v1159_v14 = vpop.xlane.xlu1 %1158 }
 0x327   : > { %v1223_v36 = vsub.f32 %v2689_v26, %v1159_v14  ;;  %v1224_v37 = vsub.f32 %v2691_v27, %v1159_v14 }
 0x328   : > { %1356 = vadd.xlane.f32.xlu1 %v1355_v35  ;;  %v1358_v35 = vadd.f32 %v2886_v19, %v2882_v51  ;;  %v3393_v51 = vld [vmem:[#allocation10_spill] sm:$0xff]  ;;  %v3394_v19 = vld [vmem:[#allocation13_spill] sm:$0xff] }
 0x329   : > { %v1347_v23 = vmul.f32 1.442695, %v1223_v36  ;;  %v1349_v56 = vmul.f32 1.442695, %v1224_v37 }
 0x32a   : > { %1365 = vadd.xlane.f32.xlu0 %v1364_v32  ;;  %v1153_v48 = vpop.xlane.xlu1 %1152  ;;  %v1162_v6 = vpop.xlane.xlu0 %1161 }
 0x32b   : > { %2241 = vpow2.f32 %v1347_v23  ;;  %v1219_v40 = vsub.f32 %v2681_v18, %v1153_v48  ;;  %v1220_v26 = vsub.f32 %v3389_v41, %v1153_v48  ;;  %v1225_v27 = vsub.f32 %v2695_v0, %v1162_v6  ;;  %v3390_v23 = vld [vmem:[#allocation16_spill] sm:$0xff] }
 0x32c   : > { %2243 = vpow2.f32 %v1349_v56  ;;  %v1226_v14 = vsub.f32 %v2699_v9, %v1162_v6  ;;  %v3391_v56 = vld [vmem:[#allocation17_spill] sm:$0xff] }
 0x32d   : > { %v1339_v61 = vmul.f32 1.442695, %v1219_v40  ;;  %v1341_v63 = vmul.f32 1.442695, %v1220_v26  ;;  %v1351_v36 = vmul.f32 1.442695, %v1225_v27 }
 0x32e   : > { %v1353_v37 = vmul.f32 1.442695, %v1226_v14  ;;  %1359 = vadd.xlane.f32.xlu0 %v1358_v35  ;;  %v1147_v32 = vpop.xlane.xlu1 %1146  ;;  %v1156_v33 = vpop.xlane.xlu0 %1155  ;;  %v3392_v35 = vld [vmem:[#allocation9_spill] sm:$0xff] }
 0x32f   : > { %2245 = vpow2.f32 %v1339_v61  ;;  %v1215_v18 = vsub.f32 %v2673_v10, %v1147_v32  ;;  %v1216_v41 = vsub.f32 %v2675_v11, %v1147_v32  ;;  %v1221_v0 = vsub.f32 %v3390_v23, %v1156_v33  ;;  %v3395_v32 = vld [vmem:[#allocation14_spill] sm:$0xff]  ;;  %v3396_v23 = vld [vmem:[#allocation11_spill] sm:$0xff] }
 0x330   : > { %2247 = vpow2.f32 %v1341_v63  ;;  %v1222_v9 = vsub.f32 %v3391_v56, %v1156_v33  ;;  %v3397_v56 = vld [vmem:[#allocation12_spill] sm:$0xff] }
 0x331   : > { %2249 = vpow2.f32 %v1351_v36  ;;  %v1331_v48 = vmul.f32 1.442695, %v1215_v18  ;;  %v1333_v6 = vmul.f32 1.442695, %v1216_v41  ;;  %v1343_v40 = vmul.f32 1.442695, %v1221_v0 }
 0x332   : > { %2251 = vpow2.f32 %v1353_v37  ;;  %v1345_v26 = vmul.f32 1.442695, %v1222_v9  ;;  %v1141_v27 = vpop.xlane.xlu1 %1140  ;;  %v1150_v14 = vpop.xlane.xlu0 %1149 }
 0x333   : > { %2253 = vpow2.f32 %v1331_v48  ;;  %v1211_v61 = vsub.f32 %v3392_v35, %v1141_v27  ;;  %v1212_v10 = vsub.f32 %v3393_v51, %v1141_v27  ;;  %v1217_v11 = vsub.f32 %v3394_v19, %v1150_v14 }
 0x334   : > { %2255 = vpow2.f32 %v1333_v6  ;;  %v1218_v63 = vsub.f32 %v3395_v32, %v1150_v14 }
 0x335   : > { %2257 = vpow2.f32 %v1343_v40  ;;  %v1323_v33 = vmul.f32 1.442695, %v1211_v61  ;;  %v1325_v36 = vmul.f32 1.442695, %v1212_v10  ;;  %v1335_v18 = vmul.f32 1.442695, %v1217_v11 }
 0x336   : > { %2259 = vpow2.f32 %v1345_v26  ;;  %v1337_v41 = vmul.f32 1.442695, %v1218_v63  ;;  %v1144_v37 = vpop.xlane.xlu0 %1143 }
 0x337   : > { %2261 = vpow2.f32 %v1323_v33  ;;  %v1213_v0 = vsub.f32 %v3396_v23, %v1144_v37  ;;  %v1214_v9 = vsub.f32 %v3397_v56, %v1144_v37 }
 0x338   : > { %v2904_v48 = vpop.eup %2241  ;;  %2263 = vpow2.f32 %v1325_v36 }
 0x339   : > { %v2906_v51 = vpop.eup %2243  ;;  %2265 = vpow2.f32 %v1335_v18  ;;  %v1327_v19 = vmul.f32 1.442695, %v1213_v0  ;;  %v1329_v6 = vmul.f32 1.442695, %v1214_v9 }
 0x33a   : > { %2267 = vpow2.f32 %v1337_v41  ;;  %v1445_v40 = vadd.f32 %v2906_v51, %v2904_v48 }
 0x33b   : > { %2269 = vpow2.f32 %v1327_v19 }
 0x33c   : > { %v2910_v26 = vpop.eup %2245  ;;  %2271 = vpow2.f32 %v1329_v6  ;;  %1446 = vadd.xlane.f32.xlu1 %v1445_v40 }
 0x33d   : > { %v2912_v27 = vpop.eup %2247 }
 0x33e   : > { %v2914_v14 = vpop.eup %2249  ;;  %v1439_v35 = vadd.f32 %v2912_v27, %v2910_v26 }
 0x33f   : > { %v2918_v61 = vpop.eup %2251 }
 0x340   : > { %v2920_v10 = vpop.eup %2253  ;;  %1440 = vadd.xlane.f32.xlu1 %v1439_v35  ;;  %v1448_v11 = vadd.f32 %v2918_v61, %v2914_v14 }
 0x341   : > { %3398 = vst [vmem:[#allocation15_spill] sm:$0xff] %v2920_v10  ;;  %v2924_v32 = vpop.eup %2255 }
 0x342   : > { %3399 = vst [vmem:[#allocation16_spill] sm:$0xff] %v2924_v32  ;;  %v2926_v63 = vpop.eup %2257  ;;  %1449 = vadd.xlane.f32.xlu0 %v1448_v11  ;;  %v1433_v33 = vadd.f32 %v2924_v32, %v2920_v10 }
 0x343   : > { %v2930_v36 = vpop.eup %2259 }
 0x344   : > { %v2932_v18 = vpop.eup %2261  ;;  %1434 = vadd.xlane.f32.xlu1 %v1433_v33  ;;  %v1442_v41 = vadd.f32 %v2930_v36, %v2926_v63 }
 0x345   : > { %3400 = vst [vmem:[#allocation17_spill] sm:$0xff] %v2932_v18  ;;  %v2936_v37 = vpop.eup %2263 }
 0x346   : > { %3401 = vst [vmem:[#allocation9_spill] sm:$0xff] %v2936_v37  ;;  %v2938_v23 = vpop.eup %2265  ;;  %1443 = vadd.xlane.f32.xlu0 %v1442_v41  ;;  %v1427_v0 = vadd.f32 %v2936_v37, %v2932_v18 }
 0x347   : > { %3402 = vst [vmem:[#allocation10_spill] sm:$0xff] %v2938_v23  ;;  %v2942_v56 = vpop.eup %2267 }
 0x348   : > { %v2944_v9 = vpop.eup %2269  ;;  %1428 = vadd.xlane.f32.xlu1 %v1427_v0  ;;  %v1436_v19 = vadd.f32 %v2942_v56, %v2938_v23 }
 0x349   : > { %3403 = vst [vmem:[#allocation13_spill] sm:$0xff] %v2944_v9  ;;  %v2948_v6 = vpop.eup %2271 }
 0x34a   : > { %3404 = vst [vmem:[#allocation14_spill] sm:$0xff] %v2948_v6  ;;  %1437 = vadd.xlane.f32.xlu0 %v1436_v19  ;;  %v1430_v40 = vadd.f32 %v2948_v6, %v2944_v9 }
 0x34e   : > { %1431 = vadd.xlane.f32.xlu0 %v1430_v40 }
 0x385   : > { %v1399_v35 = vpop.xlane.xlu1 %1398 }
 0x386   : > { %2273 = vrcp.f32 %v1399_v35 }
 0x389   : > { %v1135_v11 = vpop.xlane.xlu1 %1134 }
 0x38a   : > { %v1207_v33 = vsub.f32 %v2655_v28, %v1135_v11  ;;  %v1208_v41 = vsub.f32 %v2657_v29, %v1135_v11 }
 0x38b   : > { %v1402_v18 = vpop.xlane.xlu0 %1401 }
 0x38c   : > { %v1315_v37 = vmul.f32 1.442695, %v1207_v33  ;;  %v1317_v0 = vmul.f32 1.442695, %v1208_v41  ;;  %2275 = vrcp.f32 %v1402_v18 }
 0x38d   : > { %v1393_v10 = vpop.xlane.xlu1 %1392 }
 0x38e   : > { %2277 = vpow2.f32 %v1315_v37 }
 0x38f   : > { %2279 = vpow2.f32 %v1317_v0  ;;  %v1138_v23 = vpop.xlane.xlu0 %1137 }
 0x390   : > { %v1209_v19 = vsub.f32 %v2661_v31, %v1138_v23  ;;  %v1210_v9 = vsub.f32 %v2663_v62, %v1138_v23  ;;  %2281 = vrcp.f32 %v1393_v10 }
 0x391   : > { %v1129_v40 = vpop.xlane.xlu1 %1128 }
 0x392   : > { %v1319_v6 = vmul.f32 1.442695, %v1209_v19  ;;  %v1321_v35 = vmul.f32 1.442695, %v1210_v9  ;;  %v1203_v32 = vsub.f32 %v2639_v20, %v1129_v40  ;;  %v1204_v28 = vsub.f32 %v2641_v21, %v1129_v40 }
 0x393   : > { %v1396_v29 = vpop.xlane.xlu0 %1395  ;;  %v2274_v33 = vpop.eup %2273 }
 0x394   : > { %2283 = vpow2.f32 %v1319_v6  ;;  %v1307_v11 = vmul.f32 1.442695, %v1203_v32  ;;  %v1309_v18 = vmul.f32 1.442695, %v1204_v28  ;;  %v1512_v21 = vmul.f32 %v2274_v33, %v2747_v60 }
 0x395   : > { %2285 = vpow2.f32 %v1321_v35  ;;  %v1387_v37 = vpop.xlane.xlu1 %1386 }
 0x396   : > { %2287 = vpow2.f32 %v1307_v11 }
 0x397   : > { %2289 = vpow2.f32 %v1309_v18  ;;  %v1132_v31 = vpop.xlane.xlu0 %1131 }
 0x398   : > { %2291 = vrcp.f32 %v1396_v29  ;;  %v1205_v62 = vsub.f32 %v2647_v24, %v1132_v31  ;;  %v1206_v23 = vsub.f32 %v2649_v25, %v1132_v31  ;;  %v1511_v24 = vmul.f32 %v2274_v33, %v2744_v5 }
 0x399   : > { %v2276_v9 = vpop.eup %2275  ;;  %v1123_v20 = vpop.xlane.xlu1 %1122  ;;  %2293 = vrcp.f32 %v1387_v37 }
 0x39a   : > { %v1311_v10 = vmul.f32 1.442695, %v1205_v62  ;;  %v1313_v41 = vmul.f32 1.442695, %v1206_v23  ;;  %v1199_v32 = vsub.f32 %v2623_v12, %v1123_v20  ;;  %v1200_v6 = vsub.f32 %v2625_v13, %v1123_v20 }
 0x39b   : > { %v2963_v0 = vpop.eup %2277  ;;  %v1390_v19 = vpop.xlane.xlu0 %1389  ;;  %v1514_v40 = vmul.f32 %v2276_v9, %v2761_v49  ;;  %v1513_v25 = vmul.f32 %v2276_v9, %v2757_v4 }
 0x39c   : > { %v2968_v35 = vpop.eup %2279  ;;  %2295 = vpow2.f32 %v1311_v10  ;;  %v1299_v60 = vmul.f32 1.442695, %v1199_v32  ;;  %v1301_v28 = vmul.f32 1.442695, %v1200_v6 }
 0x39d   : > { %2297 = vpow2.f32 %v1313_v41  ;;  %v1562_v29 = vpack.c.bf16 %v1514_v40, %v1512_v21  ;;  %v1381_v12 = vpop.xlane.xlu1 %1380  ;;  %v1561_v11 = vpack.c.bf16 %v1513_v25, %v1511_v24  ;;  %v1421_v13 = vadd.f32 %v2968_v35, %v2963_v0  ;;  %v2282_v5 = vpop.eup %2281 }
 0x39e   : > { %2299 = vpow2.f32 %v1299_v60  ;;  %v1507_v24 = vmul.f32 %v2282_v5, %v2753_v54 }
 0x39f   : > { %2301 = vpow2.f32 %v1301_v28  ;;  %1659 = vmatprep.subr.bf16.mxu0 %v1562_v29  ;;  %2108 = vmatprep.subr.bf16.mxu1 %v1562_v29  ;;  %v1126_v49 = vpop.xlane.xlu0 %1125 }
 0x3a0   : > { %2303 = vrcp.f32 %v1390_v19  ;;  %1660 = vmatpush1.bf16.xpose.msra.mxu0 %v1561_v11  ;;  %2124 = vmatpush1.bf16.xpose.msra.mxu1 %v1561_v11  ;;  %v1201_v4 = vsub.f32 %v3377_v1, %v1126_v49  ;;  %v1202_v18 = vsub.f32 %v2633_v17, %v1126_v49  ;;  %v1508_v19 = vmul.f32 %v2282_v5, %v2755_v8 }
 0x3a1   : > { %v2974_v37 = vpop.eup %2283  ;;  %1422 = vadd.xlane.f32.xlu1 %v1421_v13  ;;  %v1117_v33 = vpop.xlane.xlu1 %1116  ;;  %2305 = vrcp.f32 %v1381_v12 }
 0x3a2   : > { %v2976_v31 = vpop.eup %2285  ;;  %v1303_v62 = vmul.f32 1.442695, %v1201_v4  ;;  %v1305_v23 = vmul.f32 1.442695, %v1202_v18  ;;  %v1195_v9 = vsub.f32 %v3379_v47, %v1117_v33  ;;  %v1196_v20 = vsub.f32 %v3378_v2, %v1117_v33 }
 0x3a3   : > { %v2980_v21 = vpop.eup %2287  ;;  %v1384_v10 = vpop.xlane.xlu0 %1383  ;;  %v1424_v1 = vadd.f32 %v2976_v31, %v2974_v37 }
 0x3a4   : > { %v2984_v17 = vpop.eup %2289  ;;  %2307 = vpow2.f32 %v1303_v62  ;;  %v1291_v41 = vmul.f32 1.442695, %v1195_v9  ;;  %v1293_v32 = vmul.f32 1.442695, %v1196_v20 }
 0x3a5   : > { %v2292_v6 = vpop.eup %2291  ;;  %2309 = vpow2.f32 %v1305_v23  ;;  %1425 = vadd.xlane.f32.xlu0 %v1424_v1  ;;  %v1375_v47 = vpop.xlane.xlu1 %1374  ;;  %v1415_v2 = vadd.f32 %v2984_v17, %v2980_v21 }
 0x3a6   : > { %2311 = vpow2.f32 %v1291_v41  ;;  %v1510_v40 = vmul.f32 %v2292_v6, %v2775_v53  ;;  %v1509_v25 = vmul.f32 %v2292_v6, %v2771_v58  ;;  %v2294_v28 = vpop.eup %2293 }
 0x3a7   : > { %2313 = vpow2.f32 %v1293_v32  ;;  %v1120_v60 = vpop.xlane.xlu0 %1119  ;;  %1416 = vadd.xlane.f32.xlu1 %v1415_v2  ;;  %v1504_v33 = vmul.f32 %v2294_v28, %v2783_v30  ;;  %v1503_v9 = vmul.f32 %v2294_v28, %v2778_v45 }
 0x3a8   : > { %2315 = vrcp.f32 %v1384_v10  ;;  %v1560_v29 = vpack.c.bf16 %v1510_v40, %v1508_v19  ;;  %v1559_v12 = vpack.c.bf16 %v1509_v25, %v1507_v24  ;;  %v1197_v8 = vsub.f32 %v3381_v22, %v1120_v60 }
 0x3a9   : > { %v2993_v11 = vpop.eup %2295  ;;  %v1198_v13 = vsub.f32 %v3380_v59, %v1120_v60  ;;  %v1369_v49 = vpop.xlane.xlu1 %1368  ;;  %2317 = vrcp.f32 %v1375_v47 }
 0x3aa   : > { %v2996_v4 = vpop.eup %2297  ;;  %1661 = vmatprep.subr.bf16.mxu0 %v1560_v29  ;;  %2109 = vmatprep.subr.bf16.mxu1 %v1560_v29  ;;  %v1295_v54 = vmul.f32 1.442695, %v1197_v8  ;;  %2319 = vrcp.f32 %v1369_v49 }
 0x3ab   : > { %v2998_v58 = vpop.eup %2299  ;;  %1662 = vmatpush1.bf16.xpose.msra.mxu0 %v1559_v12  ;;  %2125 = vmatpush1.bf16.xpose.msra.mxu1 %v1559_v12  ;;  %v1297_v53 = vmul.f32 1.442695, %v1198_v13  ;;  %v1378_v5 = vpop.xlane.xlu0 %1377  ;;  %v1418_v22 = vadd.f32 %v2996_v4, %v2993_v11 }
 0x3ac   : > { %v3002_v18 = vpop.eup %2301  ;;  %2321 = vpow2.f32 %v1295_v54 }
 0x3ad   : > { %v2304_v59 = vpop.eup %2303  ;;  %2323 = vpow2.f32 %v1297_v53  ;;  %1419 = vadd.xlane.f32.xlu0 %v1418_v22  ;;  %v1409_v62 = vadd.f32 %v3002_v18, %v2998_v58  ;;  %v1363_v2 = vpop.xlane.xlu1 %1362 }
 0x3ae   : > { %2325 = vrcp.f32 %v1378_v5  ;;  %v1506_v23 = vmul.f32 %v2304_v59, %v2799_v15  ;;  %v1505_v20 = vmul.f32 %v2304_v59, %v2794_v57  ;;  %v2306_v1 = vpop.eup %2305 }
 0x3af   : > { %v1372_v10 = vpop.xlane.xlu0 %1371  ;;  %1410 = vadd.xlane.f32.xlu1 %v1409_v62  ;;  %v1500_v40 = vmul.f32 %v2306_v1, %v2810_v44  ;;  %v1499_v60 = vmul.f32 %v2306_v1, %v2805_v42 }
 0x3b0   : > { %v1558_v41 = vpack.c.bf16 %v1506_v23, %v1504_v33  ;;  %v1557_v32 = vpack.c.bf16 %v1505_v20, %v1503_v9  ;;  %2327 = vrcp.f32 %v1372_v10 }
 0x3b1   : > { %v3010_v6 = vpop.eup %2307  ;;  %v1357_v59 = vpop.xlane.xlu1 %1356 }
 0x3b2   : > { %v3012_v19 = vpop.eup %2309  ;;  %1663 = vmatprep.subr.bf16.mxu0 %v1558_v41  ;;  %2110 = vmatprep.subr.bf16.mxu1 %v1558_v41  ;;  %v3405_v41 = vld [vmem:[#allocation5_spill] sm:$0xff] }
 0x3b3   : > { %v3014_v30 = vpop.eup %2311  ;;  %1664 = vmatpush1.bf16.xpose.msra.mxu0 %v1557_v32  ;;  %2126 = vmatpush1.bf16.xpose.msra.mxu1 %v1557_v32  ;;  %v1366_v15 = vpop.xlane.xlu0 %1365  ;;  %v1412_v45 = vadd.f32 %v3012_v19, %v3010_v6 }
 0x3b4   : > { %v3018_v57 = vpop.eup %2313  ;;  %2329 = vrcp.f32 %v1366_v15 }
 0x3b5   : > { %v2316_v47 = vpop.eup %2315  ;;  %1413 = vadd.xlane.f32.xlu0 %v1412_v45  ;;  %v1403_v24 = vadd.f32 %v3018_v57, %v3014_v30  ;;  %2331 = vrcp.f32 %v1363_v2 }
 0x3b6   : > { %v1502_v25 = vmul.f32 %v2316_v47, %v2825_v3  ;;  %v1501_v28 = vmul.f32 %v2316_v47, %v2820_v39  ;;  %v2318_v29 = vpop.eup %2317  ;;  %v305_v47 = vld [vmem:[%s3330_s3 + $0x50] sm:$0xff] }
 0x3b7   : > { %1404 = vadd.xlane.f32.xlu1 %v1403_v24  ;;  %v2320_v12 = vpop.eup %2319  ;;  %v1360_v3 = vpop.xlane.xlu0 %1359  ;;  %v1496_v39 = vmul.f32 %v2318_v29, %v2831_v7  ;;  %v1495_v33 = vmul.f32 %v2318_v29, %v2827_v46  ;;  %v3408_v29 = vld [vmem:[#allocation8_spill] sm:$0xff] }
 0x3b8   : > { %v1556_v8 = vpack.c.bf16 %v1502_v25, %v1500_v40  ;;  %v1555_v13 = vpack.c.bf16 %v1501_v28, %v1499_v60  ;;  %2333 = vrcp.f32 %v1360_v3  ;;  %v1492_v23 = vmul.f32 %v2320_v12, %v2842_v52  ;;  %v303_v52 = vld [vmem:[%s3330_s3 + $0x40] sm:$0xff]  ;;  %v3407_v25 = vld [vmem:[#allocation19_spill] sm:$0xff] }
 0x3b9   : > { %v3026_v49 = vpop.eup %2321  ;;  %2335 = vrcp.f32 %v1357_v59  ;;  %v1491_v1 = vmul.f32 %v2320_v12, %v2838_v50  ;;  %v3406_v50 = vld [vmem:[#allocation6_spill] sm:$0xff]  ;;  %v306_v28 = vld [vmem:[%s3330_s3 + $0x58] sm:$0xff] }
 0x3ba   : > { %v3028_v54 = vpop.eup %2323  ;;  %1665 = vmatprep.subr.bf16.mxu0 %v1556_v8  ;;  %2111 = vmatprep.subr.bf16.mxu1 %v1556_v8  ;;  %v3410_v59 = vld [vmem:[#allocation18_spill] sm:$0xff] }
 0x3bb   : > { %v2326_v44 = vpop.eup %2325  ;;  %1666 = vmatpush1.bf16.xpose.msra.mxu0 %v1555_v13  ;;  %2127 = vmatpush1.bf16.xpose.msra.mxu1 %v1555_v13  ;;  %v1406_v42 = vadd.f32 %v3028_v54, %v3026_v49  ;;  %v3409_v13 = vld [vmem:[#allocation7_spill] sm:$0xff] }
 0x3bc   : > { %v1498_v53 = vmul.f32 %v2326_v44, %v2849_v16  ;;  %v1497_v5 = vmul.f32 %v2326_v44, %v2845_v43 }
 0x3bd   : > { %v2328_v22 = vpop.eup %2327  ;;  %1407 = vadd.xlane.f32.xlu0 %v1406_v42 }
 0x3be   : > { %v1554_v62 = vpack.c.bf16 %v1498_v53, %v1496_v39  ;;  %v1494_v9 = vmul.f32 %v2328_v22, %v2864_v38  ;;  %v1553_v20 = vpack.c.bf16 %v1497_v5, %v1495_v33  ;;  %v1493_v46 = vmul.f32 %v2328_v22, %v2857_v55  ;;  %v304_v39 = vld [vmem:[%s3330_s3 + $0x48] sm:$0xff] }
 0x3bf   : > { %v308_v53 = vld [vmem:[%s3330_s3 + $0x68] sm:$0xff] }
 0x3c0   : > { %1667 = vmatprep.subr.bf16.mxu0 %v1554_v62  ;;  %2112 = vmatprep.subr.bf16.mxu1 %v1554_v62  ;;  %v1552_v7 = vpack.c.bf16 %v1494_v9, %v1492_v23  ;;  %v1551_v15 = vpack.c.bf16 %v1493_v46, %v1491_v1  ;;  %v307_v62 = vld [vmem:[%s3330_s3 + $0x60] sm:$0xff]  ;;  %v310_v23 = vld [vmem:[%s3330_s3 + $0x78] sm:$0xff]  ;;  %v300_v46 = vld [vmem:[%s3330_s3 + $0x28] sm:$0xff] }
 0x3c1   : > { %v2330_v10 = vpop.eup %2329 }
 0x3c2   : > { %v2332_v43 = vpop.eup %2331  ;;  %v1490_v38 = vmul.f32 %v2330_v10, %v2876_v34  ;;  %v1489_v24 = vmul.f32 %v2330_v10, %v3406_v50  ;;  %v302_v50 = vld [vmem:[%s3330_s3 + $0x38] sm:$0xff] }
 0x3c3   : > { %1668 = vmatpush1.bf16.xpose.msra.mxu0 %v1553_v20  ;;  %2128 = vmatpush1.bf16.xpose.msra.mxu1 %v1553_v20  ;;  %v1488_v32 = vmul.f32 %v2332_v43, %v3405_v41  ;;  %v1487_v12 = vmul.f32 %v2332_v43, %v3408_v29  ;;  %v3411_v20 = vld [vmem:[#allocation4_spill] sm:$0xff] }
 0x3c4   : > { %1669 = vmatprep.subr.bf16.mxu0 %v1552_v7  ;;  %2113 = vmatprep.subr.bf16.mxu1 %v1552_v7 }
 0x3c5   : > { %v1447_v16 = vpop.xlane.xlu1 %1446  ;;  %v1550_v45 = vpack.c.bf16 %v1490_v38, %v1488_v32  ;;  %v2334_v2 = vpop.eup %2333  ;;  %v1549_v3 = vpack.c.bf16 %v1489_v24, %v1487_v12  ;;  %v3412_v12 = vld [vmem:[#allocation16_spill] sm:$0xff] }
 0x3c6   : > { %2337 = vrcp.f32 %v1447_v16  ;;  %v2336_v34 = vpop.eup %2335  ;;  %v1486_v60 = vmul.f32 %v2334_v2, %v3407_v25  ;;  %v1485_v33 = vmul.f32 %v2334_v2, %v3410_v59  ;;  %v309_v16 = vld [vmem:[%s3330_s3 + $0x70] sm:$0xff]  ;;  %v3416_v59 = vld [vmem:[#allocation9_spill] sm:$0xff] }
 0x3c7   : > { %v1484_v44 = vmul.f32 %v2336_v34, %v3409_v13  ;;  %v1483_v7 = vmul.f32 %v2336_v34, %v3411_v20  ;;  %v301_v25 = vld [vmem:[%s3330_s3 + $0x30] sm:$0xff] }
 0x3c8   : > { %357 = vperm.xlu1 %2166, %v303_v52  }
 0x3c9   : > { %v1441_v55 = vpop.xlane.xlu1 %1440  ;;  %v1548_v42 = vpack.c.bf16 %v1486_v60, %v1484_v44  ;;  %v1547_v43 = vpack.c.bf16 %v1485_v33, %v1483_v7  ;;  %v3418_v7 = vld [vmem:[#allocation17_spill] sm:$0xff] }
 0x3cb   : > { %1670 = vmatpush1.bf16.xpose.msra.mxu0 %v1551_v15  ;;  %2129 = vmatpush1.bf16.xpose.msra.mxu1 %v1551_v15  ;;  %v1450_v40 = vpop.xlane.xlu0 %1449 }
 0x3cc   : > { %1671 = vmatprep.subr.bf16.mxu0 %v1550_v45  ;;  %2114 = vmatprep.subr.bf16.mxu1 %v1550_v45  ;;  %2339 = vrcp.f32 %v1450_v40 }
 0x3cd   : > { %367 = vperm.xlu1 %2166, %v305_v47   ;;  %2341 = vrcp.f32 %v1441_v55  ;;  %v1435_v22 = vpop.xlane.xlu1 %1434 }
 0x3cf   : > { %v1444_v8 = vpop.xlane.xlu0 %1443 }
 0x3d0   : > { %2343 = vrcp.f32 %v1444_v8 }
 0x3d1   : > { %372 = vperm.xlu1 %2166, %v306_v28   ;;  %v1429_v47 = vpop.xlane.xlu1 %1428  ;;  %v314_v28 = vld [vmem:[%s3330_s3 + $0x98] sm:$0xff] }
 0x3d3   : > { %1672 = vmatpush1.bf16.xpose.msra.mxu0 %v1549_v3  ;;  %2130 = vmatpush1.bf16.xpose.msra.mxu1 %v1549_v3  ;;  %v1438_v5 = vpop.xlane.xlu0 %1437  ;;  %v2338_v9 = vpop.eup %2337 }
 0x3d4   : > { %1673 = vmatprep.subr.bf16.mxu0 %v1548_v42  ;;  %2115 = vmatprep.subr.bf16.mxu1 %v1548_v42  ;;  %2345 = vrcp.f32 %v1438_v5  ;;  %v1544_v52 = vmul.f32 %v2338_v9, %v2906_v51  ;;  %v1543_v2 = vmul.f32 %v2338_v9, %v2904_v48  ;;  %v299_v51 = vld [vmem:[%s3330_s3 + $0x20] sm:$0xff]  ;;  %v3413_v42 = vld [vmem:[#allocation10_spill] sm:$0xff]  ;;  %v3415_v5 = vld [vmem:[#allocation15_spill] sm:$0xff] }
 0x3d5   : > { %362 = vperm.xlu0 %2165, %v304_v39   ;;  %382 = vperm.xlu1 %2166, %v308_v53   ;;  %2347 = vrcp.f32 %v1435_v22  ;;  %v311_v48 = vld [vmem:[%s3330_s3 + $0x80] sm:$0xff]  ;;  %v3417_v9 = vld [vmem:[#allocation13_spill] sm:$0xff] }
 0x3d7   : > { %v1432_v41 = vpop.xlane.xlu0 %1431 }
 0x3d8   : > { %2349 = vrcp.f32 %v1432_v41 }
 0x3d9   : > { %v2340_v10 = vpop.eup %2339  ;;  %377 = vperm.xlu0 %2165, %v307_v62   ;;  %392 = vperm.xlu1 %2166, %v310_v23   ;;  %2351 = vrcp.f32 %v1429_v47 }
 0x3da   : > { %v1546_v38 = vmul.f32 %v2340_v10, %v2918_v61  ;;  %v2342_v1 = vpop.eup %2341  ;;  %v1545_v32 = vmul.f32 %v2340_v10, %v2914_v14  ;;  %v312_v61 = vld [vmem:[%s3330_s3 + $0x88] sm:$0xff] }
 0x3db   : > { %1674 = vmatpush1.bf16.xpose.msra.mxu0 %v1547_v43  ;;  %2131 = vmatpush1.bf16.xpose.msra.mxu1 %v1547_v43  ;;  %v1540_v14 = vmul.f32 %v2342_v1, %v2912_v27  ;;  %v1539_v29 = vmul.f32 %v2342_v1, %v2910_v26  ;;  %v3414_v26 = vld [vmem:[#allocation14_spill] sm:$0xff] }
 0x3dc   : > { %v1578_v15 = vpack.c.bf16 %v1546_v38, %v1544_v52  ;;  %v1577_v40 = vpack.c.bf16 %v1545_v32, %v1543_v2 }
 0x3dd   : > { %v2344_v45 = vpop.eup %2343  ;;  %387 = vperm.xlu0 %2165, %v309_v16   ;;  %342 = vperm.xlu1 %2166, %v300_v46   ;;  %v3112_v16 = vpop.f32.mrf.mxu0 }
 0x3de   : > { %1675 = vmatprep.subr.bf16.mxu0 %v1578_v15  ;;  %2116 = vmatprep.subr.bf16.mxu1 %v1578_v15  ;;  %v1542_v55 = vmul.f32 %v2344_v45, %v2930_v36  ;;  %v1541_v36 = vmul.f32 %v2344_v45, %v2926_v63  ;;  %v313_v63 = vld [vmem:[%s3330_s3 + $0x90] sm:$0xff] }
 0x3df   : > { %v3114_v46 = vpop.f32.mrf.mxu0 }
 0x3e0   : > { %v1576_v34 = vpack.c.bf16 %v1542_v55, %v1540_v14  ;;  %v1575_v13 = vpack.c.bf16 %v1541_v36, %v1539_v29 }
 0x3e1   : > { %337 = vperm.xlu0 %2165, %v299_v51   ;;  %402 = vperm.xlu1 %2166, %v312_v61   ;;  %v2346_v24 = vpop.eup %2345  ;;  %v3116_v52 = vpop.f32.mrf.mxu0 }
 0x3e2   : > { %v2348_v27 = vpop.eup %2347  ;;  %v1538_v60 = vmul.f32 %v2346_v24, %v2942_v56  ;;  %v1537_v39 = vmul.f32 %v2346_v24, %v3413_v42 }
 0x3e3   : > { %1676 = vmatpush2.bf16.xpose.msra.mxu0 %v1577_v40  ;;  %2132 = vmatpush2.bf16.xpose.msra.mxu1 %v1577_v40  ;;  %v1536_v8 = vmul.f32 %v2348_v27, %v3412_v12  ;;  %v1535_v22 = vmul.f32 %v2348_v27, %v3415_v5  ;;  %v3118_v38 = vpop.f32.mrf.mxu0 }
 0x3e4   : > { %1677 = vmatprep.subr.bf16.mxu0 %v1576_v34  ;;  %2117 = vmatprep.subr.bf16.mxu1 %v1576_v34 }
 0x3e5   : > { %397 = vperm.xlu0 %2165, %v311_v48   ;;  %352 = vperm.xlu1 %2166, %v302_v50   ;;  %v1574_v44 = vpack.c.bf16 %v1538_v60, %v1536_v8  ;;  %v2350_v3 = vpop.eup %2349  ;;  %v1573_v62 = vpack.c.bf16 %v1537_v39, %v1535_v22  ;;  %v3120_v1 = vpop.f32.mrf.mxu0 }
 0x3e6   : > { %v2352_v56 = vpop.eup %2351  ;;  %v1534_v53 = vmul.f32 %v2350_v3, %v3414_v26  ;;  %v1533_v20 = vmul.f32 %v2350_v3, %v3417_v9 }
 0x3e7   : > { %v1532_v33 = vmul.f32 %v2352_v56, %v3416_v59  ;;  %v1531_v10 = vmul.f32 %v2352_v56, %v3418_v7  ;;  %v3122_v41 = vpop.f32.mrf.mxu0 }
 0x3e9   : > { %347 = vperm.xlu0 %2165, %v301_v25   ;;  %412 = vperm.xlu1 %2166, %v314_v28   ;;  %v1572_v23 = vpack.c.bf16 %v1534_v53, %v1532_v33  ;;  %v1571_v43 = vpack.c.bf16 %v1533_v20, %v1531_v10  ;;  %v3124_v32 = vpop.f32.mrf.mxu0 }
 0x3eb   : > { %1678 = vmatpush2.bf16.xpose.msra.mxu0 %v1575_v13  ;;  %2133 = vmatpush2.bf16.xpose.msra.mxu1 %v1575_v13  ;;  %v3126_v15 = vpop.f32.mrf.mxu0 }
 0x3ec   : > { %1679 = vmatprep.subr.bf16.mxu0 %v1574_v44  ;;  %2118 = vmatprep.subr.bf16.mxu1 %v1574_v44 }
 0x3ed   : > { %407 = vperm.xlu0 %2165, %v313_v63   ;;  %v3128_v45 = vpop.f32.mrf.mxu0 }
 0x3ef   : > { %v3130_v47 = vpop.f32.mrf.mxu0 }
 0x3f1   : > { %v3132_v2 = vpop.f32.mrf.mxu0 }
 0x3f3   : > { %1680 = vmatpush2.bf16.xpose.msra.mxu0 %v1573_v62  ;;  %2134 = vmatpush2.bf16.xpose.msra.mxu1 %v1573_v62  ;;  %v3134_v51 = vpop.f32.mrf.mxu0 }
 0x3f4   : > { %1681 = vmatprep.subr.bf16.mxu0 %v1572_v23  ;;  %2119 = vmatprep.subr.bf16.mxu1 %v1572_v23 }
 0x3f5   : > { %v3136_v14 = vpop.f32.mrf.mxu0 }
 0x3f7   : > { %v3138_v40 = vpop.f32.mrf.mxu0 }
 0x3f9   : > { %v3140_v48 = vpop.f32.mrf.mxu0 }
 0x3fb   : > { %1682 = vmatpush2.bf16.xpose.msra.mxu0 %v1571_v43  ;;  %2135 = vmatpush2.bf16.xpose.msra.mxu1 %v1571_v43  ;;  %v3142_v27 = vpop.f32.mrf.mxu0 }
 0x3fd   : > { %v3148_v8 = vpop.f32.mrf.mxu0 }
 0x3ff   : > { %v3150_v56 = vpop.f32.mrf.mxu0 }
 0x401   : > { %v3158_v53 = vpop.f32.mrf.mxu0 }
 0x403   : > { %v3162_v23 = vpop.f32.mrf.mxu0 }
 0x42a   : > { %v1423_v61 = vpop.xlane.xlu1 %1422 }
 0x42b   : > { %2353 = vrcp.f32 %v1423_v61 }
 0x42e   : > { %v1426_v55 = vpop.xlane.xlu0 %1425 }
 0x42f   : > { %2355 = vrcp.f32 %v1426_v55 }
 0x430   : > { %v1417_v34 = vpop.xlane.xlu1 %1416 }
 0x431   : > { %2357 = vrcp.f32 %v1417_v34 }
 0x436   : > { %v1420_v50 = vpop.xlane.xlu0 %1419 }
 0x437   : > { %2359 = vrcp.f32 %v1420_v50 }
 0x438   : > { %v1411_v24 = vpop.xlane.xlu1 %1410  ;;  %v2354_v36 = vpop.eup %2353 }
 0x439   : > { %2361 = vrcp.f32 %v1411_v24  ;;  %v1528_v60 = vmul.f32 %v2354_v36, %v2968_v35  ;;  %v1527_v29 = vmul.f32 %v2354_v36, %v2963_v0 }
 0x43c   : > { %v2356_v25 = vpop.eup %2355 }
 0x43d   : > { %v1530_v28 = vmul.f32 %v2356_v25, %v2976_v31  ;;  %v1529_v12 = vmul.f32 %v2356_v25, %v2974_v37 }
 0x43e   : > { %v1414_v13 = vpop.xlane.xlu0 %1413  ;;  %v2358_v42 = vpop.eup %2357 }
 0x43f   : > { %2363 = vrcp.f32 %v1414_v13  ;;  %v1570_v44 = vpack.c.bf16 %v1530_v28, %v1528_v60  ;;  %v1569_v63 = vpack.c.bf16 %v1529_v12, %v1527_v29  ;;  %v1524_v0 = vmul.f32 %v2358_v42, %v2984_v17 }
 0x440   : > { %v1405_v3 = vpop.xlane.xlu1 %1404  ;;  %v1523_v39 = vmul.f32 %v2358_v42, %v2980_v21 }
 0x441   : > { %1683 = vmatprep.subr.bf16.mxu0 %v1570_v44  ;;  %2120 = vmatprep.subr.bf16.mxu1 %v1570_v44  ;;  %2365 = vrcp.f32 %v1405_v3 }
 0x442   : > { %1684 = vmatpush2.bf16.xpose.msra.mxu0 %v1569_v63  ;;  %2136 = vmatpush2.bf16.xpose.msra.mxu1 %v1569_v63 }
 0x444   : > { %v2360_v35 = vpop.eup %2359  ;;  %v3152_v31 = vpop.permute.xlu1 %357 }
 0x445   : > { %v1526_v37 = vmul.f32 %v2360_v35, %v2996_v4  ;;  %v1525_v26 = vmul.f32 %v2360_v35, %v2993_v11  ;;  %v3164_v4 = vpop.f32.mrf.mxu0  ;;  %v552_v34 = vadd.f32 %v3130_v47, %v3152_v31 }
 0x446   : > { %v1408_v5 = vpop.xlane.xlu0 %1407  ;;  %v2362_v62 = vpop.eup %2361 }
 0x447   : > { %2367 = vrcp.f32 %v1408_v5  ;;  %v1568_v22 = vpack.c.bf16 %v1526_v37, %v1524_v0  ;;  %v1567_v59 = vpack.c.bf16 %v1525_v26, %v1523_v39  ;;  %v1520_v11 = vmul.f32 %v2362_v62, %v3002_v18  ;;  %v3175_v24 = vpop.f32.mrf.mxu0 }
 0x448   : > { %v3160_v33 = vpop.permute.xlu1 %367  ;;  %v1519_v20 = vmul.f32 %v2362_v62, %v2998_v58  ;;  %v550_v39 = vadd.f32 %v3128_v45, %v3152_v31 }
 0x449   : > { %1685 = vmatprep.subr.bf16.mxu0 %v1568_v22  ;;  %2121 = vmatprep.subr.bf16.mxu1 %v1568_v22  ;;  %v3179_v25 = vpop.f32.mrf.mxu0 }
 0x44a   : > { %1686 = vmatpush2.bf16.xpose.msra.mxu0 %v1567_v59  ;;  %2137 = vmatpush2.bf16.xpose.msra.mxu1 %v1567_v59 }
 0x44b   : > { %v585_v63 = vpop.f32.mrf.mxu0 }
 0x44c   : > { %v2364_v17 = vpop.eup %2363  ;;  %v373_v21 = vpop.permute.xlu1 %372 }
 0x44d   : > { %v1522_v9 = vmul.f32 %v2364_v17, %v3012_v19  ;;  %v1521_v7 = vmul.f32 %v2364_v17, %v3010_v6 }
 0x44e   : > { %v2366_v18 = vpop.eup %2365 }
 0x44f   : > { %v1566_v10 = vpack.c.bf16 %v1522_v9, %v1520_v11  ;;  %v1565_v43 = vpack.c.bf16 %v1521_v7, %v1519_v20  ;;  %v1516_v60 = vmul.f32 %v2366_v18, %v3018_v57  ;;  %v560_v20 = vadd.f32 %v3136_v14, %v3160_v33 }
 0x450   : > { %v363_v61 = vpop.permute.xlu0 %362  ;;  %v3170_v55 = vpop.permute.xlu1 %382 }
 0x451   : > { %v556_v50 = vadd.f32 %v3134_v51, %v363_v61  ;;  %1687 = vmatprep.subr.bf16.mxu0 %v1566_v10  ;;  %2122 = vmatprep.subr.bf16.mxu1 %v1566_v10  ;;  %v1515_v51 = vmul.f32 %v2366_v18, %v3014_v30  ;;  %v554_v42 = vadd.f32 %v3132_v2, %v363_v61 }
 0x452   : > { %1688 = vmatpush2.bf16.xpose.msra.mxu0 %v1565_v43  ;;  %2138 = vmatpush2.bf16.xpose.msra.mxu1 %v1565_v43  ;;  %v566_v30 = vadd.f32 %v3142_v27, %v373_v21 }
 0x453   : > { %v2097_v58 = vpack.c.bf16 %v556_v50, %v552_v34  ;;  %v2096_v5 = vpack.c.bf16 %v554_v42, %v550_v39 }
 0x454   : > { %v2368_v19 = vpop.eup %2367  ;;  %v378_v6 = vpop.permute.xlu0 %377 }
 0x455   : > { %v3177_v36 = vpop.permute.xlu1 %392  ;;  %1711 = vmatprep.mubr.bf16.mxu1 %v2097_v58  ;;  %v1518_v47 = vmul.f32 %v2368_v19, %v3028_v54  ;;  %v1517_v28 = vmul.f32 %v2368_v19, %v3026_v49  ;;  %v589_v49 = vpop.f32.mrf.mxu0  ;;  %v572_v31 = vadd.f32 %v3150_v56, %v378_v6  ;;  %v570_v56 = vadd.f32 %v3148_v8, %v378_v6 }
 0x456   : > { %v584_v61 = vadd.f32 %v3179_v25, %v3177_v36 }
 0x457   : > { %v1564_v12 = vpack.c.bf16 %v1518_v47, %v1516_v60  ;;  %v1563_v44 = vpack.c.bf16 %v1517_v28, %v1515_v51  ;;  %v591_v62 = vpop.f32.mrf.mxu0 }
 0x458   : > { %v388_v29 = vpop.permute.xlu0 %387 }
 0x459   : > { %v343_v13 = vpop.permute.xlu1 %342  ;;  %1689 = vmatprep.subr.bf16.mxu0 %v1564_v12  ;;  %2123 = vmatprep.subr.bf16.mxu1 %v1564_v12  ;;  %v593_v17 = vpop.f32.mrf.mxu0  ;;  %v580_v34 = vadd.f32 %v3164_v4, %v388_v29  ;;  %v3213_v12 = vstv %s1806_s16 }
 0x45a   : > { %v536_v3 = vadd.f32 %v3118_v38, %v343_v13  ;;  %1690 = vmatpush2.bf16.xpose.msra.mxu0 %v1563_v44  ;;  %2139 = vmatpush2.bf16.xpose.msra.mxu1 %v1563_v44  ;;  %v534_v57 = vadd.f32 %v3116_v52, %v343_v13  ;;  %v562_v38 = vadd.f32 %v3138_v40, %v3160_v33  ;;  %v1774_v44 = vld [vmem:[%s2464_s5] sm:$0xff] }
 0x45b   : > { %v576_v40 = vadd.f32 %v3162_v23, %v3170_v55 }
 0x45c   : > { %v338_v54 = vpop.permute.xlu0 %337  ;;  %v2099_v59 = vpack.c.bf16 %v566_v30, %v562_v38 }
 0x45d   : > { %v403_v35 = vpop.permute.xlu1 %402  ;;  %v530_v0 = vadd.f32 %v3112_v16, %v338_v54  ;;  %v532_v37 = vadd.f32 %v3114_v46, %v338_v54  ;;  %v564_v46 = vadd.f32 %v3140_v48, %v373_v21  ;;  %v2101_v48 = vpack.c.bf16 %v576_v40, %v572_v31  ;;  %v595_v21 = vpop.f32.mrf.mxu0  ;;  %v1785_v40 = vld [vmem:[%s2464_s5 + $0x58] sm:$0xff] }
 0x45e   : > { %v596_v50 = vadd.f32 %v595_v21, %v403_v35 }
 0x45f   : > { %v2093_v26 = vpack.c.bf16 %v536_v3, %v532_v37  ;;  %v2092_v2 = vpack.c.bf16 %v534_v57, %v530_v0  ;;  %v2098_v7 = vpack.c.bf16 %v564_v46, %v560_v20  ;;  %v599_v23 = vpop.f32.mrf.mxu0  ;;  %v1782_v3 = vld [vmem:[%s2464_s5 + $0x40] sm:$0xff] }
 0x460   : > { %v398_v22 = vpop.permute.xlu0 %397 }
 0x461   : > { %v353_v52 = vpop.permute.xlu1 %352  ;;  %1691 = vmatprep.mubr.bf16.mxu0 %v2093_v26  ;;  %1712 = vmatmul.mubr.bf16.vlgmr.msra.gmra.mxu1 %v2096_v5  ;;  %v601_v43 = vpop.f32.mrf.mxu0  ;;  %v592_v18 = vadd.f32 %v591_v62, %v398_v22  ;;  %v590_v60 = vadd.f32 %v589_v49, %v398_v22  ;;  %v1783_v49 = vld [vmem:[%s2464_s5 + $0x48] sm:$0xff]  ;;  %v1776_v5 = vld [vmem:[%s2464_s5 + $0x10] sm:$0xff] }
 0x462   : > { %1692 = vmatmul.mubr.bf16.vlgmr.msra.gmra.mxu0 %v2092_v2  ;;  %v546_v16 = vadd.f32 %v3126_v15, %v353_v52  ;;  %1721 = vmatprep.mubr.bf16.mxu1 %v2099_v59  ;;  %v544_v45 = vadd.f32 %v3124_v32, %v353_v52  ;;  %v574_v32 = vadd.f32 %v3158_v53, %v3170_v55  ;;  %v1784_v22 = vld [vmem:[%s2464_s5 + $0x50] sm:$0xff] }
 0x463   : > { %v603_v53 = vpop.f32.mrf.mxu0  ;;  %v2102_v55 = vpack.c.bf16 %v584_v61, %v580_v34  ;;  %v2105_v8 = vpack.c.bf16 %v596_v50, %v592_v18  ;;  %v1780_v18 = vld [vmem:[%s2464_s5 + $0x30] sm:$0xff] }
 0x464   : > { %v348_v27 = vpop.permute.xlu0 %347  ;;  %v2100_v14 = vpack.c.bf16 %v574_v32, %v570_v56 }
 0x465   : > { %v540_v11 = vadd.f32 %v3120_v1, %v348_v27  ;;  %v542_v9 = vadd.f32 %v3122_v41, %v348_v27  ;;  %v586_v1 = vadd.f32 %v585_v63, %v3177_v36  ;;  %v582_v41 = vadd.f32 %v3175_v24, %v388_v29  ;;  %v605_v58 = vpop.f32.mrf.mxu0  ;;  %v413_v19 = vpop.permute.xlu1 %412 }
 0x466   : > { %v594_v24 = vadd.f32 %v593_v17, %v403_v35  ;;  %v606_v47 = vadd.f32 %v605_v58, %v413_v19  ;;  %v604_v4 = vadd.f32 %v603_v53, %v413_v19  ;;  %v1775_v35 = vld [vmem:[%s2464_s5 + $0x8] sm:$0xff] }
 0x467   : > { %v2095_v15 = vpack.c.bf16 %v546_v16, %v542_v9  ;;  %v2094_v10 = vpack.c.bf16 %v544_v45, %v540_v11  ;;  %v2103_v33 = vpack.c.bf16 %v586_v1, %v582_v41  ;;  %v1777_v45 = vld [vmem:[%s2464_s5 + $0x18] sm:$0xff]  ;;  %v1779_v41 = vld [vmem:[%s2464_s5 + $0x28] sm:$0xff] }
 0x468   : > { %v408_v6 = vpop.permute.xlu0 %407  ;;  %v2104_v28 = vpack.c.bf16 %v594_v24, %v590_v60  ;;  %v1781_v60 = vld [vmem:[%s2464_s5 + $0x38] sm:$0xff] }
 0x469   : > { %1701 = vmatprep.mubr.bf16.mxu0 %v2095_v15  ;;  %1722 = vmatmul.mubr.bf16.gmra.mxu1 %v2098_v7  ;;  %v602_v51 = vadd.f32 %v601_v43, %v408_v6  ;;  %v600_v25 = vadd.f32 %v599_v23, %v408_v6  ;;  %v1778_v15 = vld [vmem:[%s2464_s5 + $0x20] sm:$0xff] }
 0x46a   : > { %1702 = vmatmul.mubr.bf16.gmra.mxu0 %v2094_v10  ;;  %1731 = vmatprep.mubr.bf16.mxu1 %v2101_v48  ;;  %v1786_v10 = vld [vmem:[%s2464_s5 + $0x60] sm:$0xff] }
 0x46b   : > { %v2107_v36 = vpack.c.bf16 %v606_v47, %v602_v51  ;;  %v2106_v29 = vpack.c.bf16 %v604_v4, %v600_v25  ;;  %v1789_v51 = vld [vmem:[%s2464_s5 + $0x78] sm:$0xff] }
 0x471   : > { %1732 = vmatmul.mubr.bf16.gmra.mxu1 %v2100_v14  ;;  %v1787_v14 = vld [vmem:[%s2464_s5 + $0x68] sm:$0xff] }
 0x472   : > { %1741 = vmatprep.mubr.bf16.mxu1 %v2103_v33 }
 0x479   : > { %1742 = vmatmul.mubr.bf16.gmra.mxu1 %v2102_v55  ;;  %v1788_v55 = vld [vmem:[%s2464_s5 + $0x70] sm:$0xff] }
 0x47a   : > { %1751 = vmatprep.mubr.bf16.mxu1 %v2105_v8 }
 0x481   : > { %1752 = vmatmul.mubr.bf16.gmra.mxu1 %v2104_v28 }
 0x482   : > { %1761 = vmatprep.mubr.bf16.mxu1 %v2107_v36 }
 0x489   : > { %1762 = vmatmul.mubr.bf16.gmra.mxu1 %v2106_v29 }
 0x521   : > { %v1713_v63 = vpop.f32.mrf.mxu1 }
 0x522   : > { %v1693_v13 = vpop.f32.mrf.mxu0  ;;  %v1816_v57 = vmul.f32 %v3213_v12, %v1713_v63 }
 0x523   : > { %v1808_v42 = vmul.f32 %v3213_v12, %v1693_v13  ;;  %v1715_v30 = vpop.f32.mrf.mxu1  ;;  %v1790_v13 = vld [vmem:[%s2464_s5 + $0x80] sm:$0xff] }
 0x524   : > { %v1695_v54 = vpop.f32.mrf.mxu0  ;;  %v1848_v37 = vadd.f32 %v1816_v57, %v1782_v3  ;;  %v1817_v38 = vmul.f32 %v3213_v12, %v1715_v30  ;;  %v1791_v57 = vld [vmem:[%s2464_s5 + $0x88] sm:$0xff] }
 0x525   : > { %v1840_v0 = vadd.f32 %v1808_v42, %v1774_v44  ;;  %v1809_v39 = vmul.f32 %v3213_v12, %v1695_v54  ;;  %v1717_v2 = vpop.f32.mrf.mxu1 }
 0x526   : > { %v1697_v26 = vpop.f32.mrf.mxu0  ;;  %1880 = vst [vmem:[%s3224_s22 + $0x40] sm:$0xff] %v1848_v37  ;;  %v1849_v59 = vadd.f32 %v1817_v38, %v1783_v49  ;;  %v1818_v16 = vmul.f32 %v3213_v12, %v1717_v2  ;;  %v1792_v49 = vld [vmem:[%s2464_s5 + $0x90] sm:$0xff]  ;;  %v1793_v38 = vld [vmem:[%s2464_s5 + $0x98] sm:$0xff] }
 0x527   : > { %1872 = vst [vmem:[%s3224_s22] sm:$0xff] %v1840_v0  ;;  %v1841_v52 = vadd.f32 %v1809_v39, %v1775_v35  ;;  %v1810_v62 = vmul.f32 %v3213_v12, %v1697_v26  ;;  %v1719_v27 = vpop.f32.mrf.mxu1 }
 0x528   : > { %v1699_v46 = vpop.f32.mrf.mxu0  ;;  %1881 = vst [vmem:[%s3224_s22 + $0x48] sm:$0xff] %v1849_v59  ;;  %v1850_v17 = vadd.f32 %v1818_v16, %v1784_v22  ;;  %v1819_v9 = vmul.f32 %v3213_v12, %v1719_v27  ;;  %v1794_v22 = vld [vmem:[%s2464_s5 + $0xa0] sm:$0xff]  ;;  %v1795_v16 = vld [vmem:[%s2464_s5 + $0xa8] sm:$0xff] }
 0x529   : > { %1873 = vst [vmem:[%s3224_s22 + $0x8] sm:$0xff] %v1841_v52  ;;  %v1842_v31 = vadd.f32 %v1810_v62, %v1776_v5  ;;  %v1811_v11 = vmul.f32 %v3213_v12, %v1699_v46  ;;  %v1723_v7 = vpop.f32.mrf.mxu1 }
 0x52a   : > { %v1703_v20 = vpop.f32.mrf.mxu0  ;;  %1882 = vst [vmem:[%s3224_s22 + $0x50] sm:$0xff] %v1850_v17  ;;  %v1851_v21 = vadd.f32 %v1819_v9, %v1785_v40  ;;  %v1820_v56 = vmul.f32 %v3213_v12, %v1723_v7  ;;  %v1796_v40 = vld [vmem:[%s2464_s5 + $0xb0] sm:$0xff]  ;;  %v1797_v9 = vld [vmem:[%s2464_s5 + $0xb8] sm:$0xff] }
 0x52b   : > { %1874 = vst [vmem:[%s3224_s22 + $0x10] sm:$0xff] %v1842_v31  ;;  %v1843_v48 = vadd.f32 %v1811_v11, %v1777_v45  ;;  %v1812_v32 = vmul.f32 %v3213_v12, %v1703_v20  ;;  %v1725_v23 = vpop.f32.mrf.mxu1 }
 0x52c   : > { %v1705_v1 = vpop.f32.mrf.mxu0  ;;  %1883 = vst [vmem:[%s3224_s22 + $0x58] sm:$0xff] %v1851_v21  ;;  %v1852_v43 = vadd.f32 %v1820_v56, %v1786_v10  ;;  %v1821_v34 = vmul.f32 %v3213_v12, %v1725_v23  ;;  %v1798_v10 = vld [vmem:[%s2464_s5 + $0xc0] sm:$0xff]  ;;  %v1799_v56 = vld [vmem:[%s2464_s5 + $0xc8] sm:$0xff] }
 0x52d   : > { %1875 = vst [vmem:[%s3224_s22 + $0x18] sm:$0xff] %v1843_v48  ;;  %v1844_v33 = vadd.f32 %v1812_v32, %v1778_v15  ;;  %v1813_v61 = vmul.f32 %v3213_v12, %v1705_v1  ;;  %v1727_v53 = vpop.f32.mrf.mxu1 }
 0x52e   : > { %v1707_v50 = vpop.f32.mrf.mxu0  ;;  %1884 = vst [vmem:[%s3224_s22 + $0x60] sm:$0xff] %v1852_v43  ;;  %v1853_v58 = vadd.f32 %v1821_v34, %v1787_v14  ;;  %v1822_v6 = vmul.f32 %v3213_v12, %v1727_v53  ;;  %v1800_v14 = vld [vmem:[%s2464_s5 + $0xd0] sm:$0xff]  ;;  %v1801_v34 = vld [vmem:[%s2464_s5 + $0xd8] sm:$0xff] }
 0x52f   : > { %1876 = vst [vmem:[%s3224_s22 + $0x20] sm:$0xff] %v1844_v33  ;;  %v1845_v8 = vadd.f32 %v1813_v61, %v1779_v41  ;;  %v1814_v19 = vmul.f32 %v3213_v12, %v1707_v50  ;;  %v1729_v47 = vpop.f32.mrf.mxu1 }
 0x530   : > { %v1709_v24 = vpop.f32.mrf.mxu0  ;;  %1885 = vst [vmem:[%s3224_s22 + $0x68] sm:$0xff] %v1853_v58  ;;  %v1854_v36 = vadd.f32 %v1822_v6, %v1788_v55  ;;  %v1823_v25 = vmul.f32 %v3213_v12, %v1729_v47  ;;  %v1802_v55 = vld [vmem:[%s2464_s5 + $0xe0] sm:$0xff]  ;;  %v1803_v6 = vld [vmem:[%s2464_s5 + $0xe8] sm:$0xff] }
 0x531   : > { %1877 = vst [vmem:[%s3224_s22 + $0x28] sm:$0xff] %v1845_v8  ;;  %v1846_v28 = vadd.f32 %v1814_v19, %v1780_v18  ;;  %v1815_v4 = vmul.f32 %v3213_v12, %v1709_v24  ;;  %v1733_v29 = vpop.f32.mrf.mxu1 }
 0x532   : > { %1886 = vst [vmem:[%s3224_s22 + $0x70] sm:$0xff] %v1854_v36  ;;  %v1855_v63 = vadd.f32 %v1823_v25, %v1789_v51  ;;  %v1824_v3 = vmul.f32 %v3213_v12, %v1733_v29  ;;  %v1804_v51 = vld [vmem:[%s2464_s5 + $0xf0] sm:$0xff]  ;;  %v1805_v25 = vld [vmem:[%s2464_s5 + $0xf8] sm:$0xff] }
 0x533   : > { %1878 = vst [vmem:[%s3224_s22 + $0x30] sm:$0xff] %v1846_v28  ;;  %v1847_v44 = vadd.f32 %v1815_v4, %v1781_v60  ;;  %v1735_v42 = vpop.f32.mrf.mxu1 }
 0x534   : > { %1887 = vst [vmem:[%s3224_s22 + $0x78] sm:$0xff] %v1855_v63  ;;  %v1856_v54 = vadd.f32 %v1824_v3, %v1790_v13  ;;  %v1825_v35 = vmul.f32 %v3213_v12, %v1735_v42 }
 0x535   : > { %1879 = vst [vmem:[%s3224_s22 + $0x38] sm:$0xff] %v1847_v44  ;;  %v1737_v30 = vpop.f32.mrf.mxu1 }
 0x536   : > { %1888 = vst [vmem:[%s3224_s22 + $0x80] sm:$0xff] %v1856_v54  ;;  %v1857_v0 = vadd.f32 %v1825_v35, %v1791_v57  ;;  %v1826_v37 = vmul.f32 %v3213_v12, %v1737_v30 }
 0x537   : > { %v1739_v39 = vpop.f32.mrf.mxu1 }
 0x538   : > { %1889 = vst [vmem:[%s3224_s22 + $0x88] sm:$0xff] %v1857_v0  ;;  %v1858_v26 = vadd.f32 %v1826_v37, %v1792_v49  ;;  %v1827_v5 = vmul.f32 %v3213_v12, %v1739_v39 }
 0x539   : > { %v1743_v2 = vpop.f32.mrf.mxu1 }
 0x53a   : > { %1890 = vst [vmem:[%s3224_s22 + $0x90] sm:$0xff] %v1858_v26  ;;  %v1859_v52 = vadd.f32 %v1827_v5, %v1793_v38  ;;  %v1828_v59 = vmul.f32 %v3213_v12, %v1743_v2 }
 0x53b   : > { %v1745_v62 = vpop.f32.mrf.mxu1 }
 0x53c   : > { %1891 = vst [vmem:[%s3224_s22 + $0x98] sm:$0xff] %v1859_v52  ;;  %v1860_v46 = vadd.f32 %v1828_v59, %v1794_v22  ;;  %v1829_v45 = vmul.f32 %v3213_v12, %v1745_v62 }
 0x53d   : > { %v1747_v27 = vpop.f32.mrf.mxu1 }
 0x53e   : > { %1892 = vst [vmem:[%s3224_s22 + $0xa0] sm:$0xff] %v1860_v46  ;;  %v1861_v31 = vadd.f32 %v1829_v45, %v1795_v16  ;;  %v1830_v17 = vmul.f32 %v3213_v12, %v1747_v27 }
 0x53f   : > { %v1749_v11 = vpop.f32.mrf.mxu1 }
 0x540   : > { %1893 = vst [vmem:[%s3224_s22 + $0xa8] sm:$0xff] %v1861_v31  ;;  %v1862_v20 = vadd.f32 %v1830_v17, %v1796_v40  ;;  %v1831_v15 = vmul.f32 %v3213_v12, %v1749_v11 }
 0x541   : > { %v1753_v7 = vpop.f32.mrf.mxu1 }
 0x542   : > { %1894 = vst [vmem:[%s3224_s22 + $0xb0] sm:$0xff] %v1862_v20  ;;  %v1863_v48 = vadd.f32 %v1831_v15, %v1797_v9  ;;  %v1832_v21 = vmul.f32 %v3213_v12, %v1753_v7 }
 0x543   : > { %v1755_v32 = vpop.f32.mrf.mxu1 }
 0x544   : > { %1895 = vst [vmem:[%s3224_s22 + $0xb8] sm:$0xff] %v1863_v48  ;;  %v1864_v1 = vadd.f32 %v1832_v21, %v1798_v10  ;;  %v1833_v41 = vmul.f32 %v3213_v12, %v1755_v32 }
 0x545   : > { %v1757_v23 = vpop.f32.mrf.mxu1 }
 0x546   : > { %1896 = vst [vmem:[%s3224_s22 + $0xc0] sm:$0xff] %v1864_v1  ;;  %v1865_v33 = vadd.f32 %v1833_v41, %v1799_v56  ;;  %v1834_v43 = vmul.f32 %v3213_v12, %v1757_v23 }
 0x547   : > { %v1759_v61 = vpop.f32.mrf.mxu1 }
 0x548   : > { %1897 = vst [vmem:[%s3224_s22 + $0xc8] sm:$0xff] %v1865_v33  ;;  %v1866_v50 = vadd.f32 %v1834_v43, %v1800_v14  ;;  %v1835_v18 = vmul.f32 %v3213_v12, %v1759_v61 }
 0x549   : > { %v1763_v53 = vpop.f32.mrf.mxu1 }
 0x54a   : > { %1898 = vst [vmem:[%s3224_s22 + $0xd0] sm:$0xff] %v1866_v50  ;;  %v1867_v8 = vadd.f32 %v1835_v18, %v1801_v34  ;;  %v1836_v58 = vmul.f32 %v3213_v12, %v1763_v53 }
 0x54b   : > { %v1765_v19 = vpop.f32.mrf.mxu1 }
 0x54c   : > { %1899 = vst [vmem:[%s3224_s22 + $0xd8] sm:$0xff] %v1867_v8  ;;  %v1868_v24 = vadd.f32 %v1836_v58, %v1802_v55  ;;  %v1837_v60 = vmul.f32 %v3213_v12, %v1765_v19 }
 0x54d   : > { %v1767_v47 = vpop.f32.mrf.mxu1 }
 0x54e   : > { %1900 = vst [vmem:[%s3224_s22 + $0xe0] sm:$0xff] %v1868_v24  ;;  %v1869_v28 = vadd.f32 %v1837_v60, %v1803_v6  ;;  %v1838_v36 = vmul.f32 %v3213_v12, %v1767_v47 }
 0x54f   : > { %v1769_v4 = vpop.f32.mrf.mxu1 }
 0x550   : > { %1901 = vst [vmem:[%s3224_s22 + $0xe8] sm:$0xff] %v1869_v28  ;;  %v1870_v29 = vadd.f32 %v1838_v36, %v1804_v51  ;;  %v1839_v13 = vmul.f32 %v3213_v12, %v1769_v4 }
 0x552   : > { %1902 = vst [vmem:[%s3224_s22 + $0xf0] sm:$0xff] %v1870_v29  ;;  %v1871_v44 = vadd.f32 %v1839_v13, %v1805_v25 }
 0x554   : > { %1903 = vst [vmem:[%s3224_s22 + $0xf8] sm:$0xff] %v1871_v44 }
 0x555 PF: > { %s15_s19 = sadd.s32 1, %s2391_s19   ;;  %s3419_s17 = smov %s2387_s18 }
 0x556   : > { %p12_p5 = scmp.ge.s32.totalorder %s15_s19, 4   ;;  %s3420_s18 = smov %s3422_s0 }
 0x558   :  { %14 = sbr.rel (!%p12_p5) target bundleno = 2 (0x2), region = 72 }

</bundles_post_ra>
